<compile_context>
chip_gen: v5e
topology: v5e:2x2
jax: 0.10.0
libtpu: 0.0.40
codegen_flags: <defaults>
</compile_context>

<pallas_src>
import functools

import jax
import jax.numpy as jnp
from jax import lax
from jax.experimental import pallas as pl
from jax.experimental.pallas import tpu as pltpu


def _mha_kernel(seqs_ref, keys_ref, vals_ref,
                wq_hbm, wk_hbm, wv_hbm, wo_hbm,
                bq_ref, bk_ref, bv_ref, bo_ref,
                out_ref,
                wq_vmem, wo_vmem, w_tmp,
                k_cache, v_cache, o_scratch,
                *, num_heads, head_dim):
    H, D = num_heads, head_dim
    bf = jnp.bfloat16
    scale = 1.0 / (float(D) ** 0.5)

    # ---- Per-batch prologue (first query tile of this batch element) --------
    # Stage the weights into single-buffered VMEM scratch and project K/V once.
    # Legal because the qi axis is "arbitrary" (sequential, innermost) and the
    # scratch persists across grid steps.
    @pl.when(pl.program_id(1) == 0)
    def _():
        pltpu.sync_copy(wq_hbm, wq_vmem)          # resident: used every qi step
        pltpu.sync_copy(wo_hbm, wo_vmem)          # resident: used every qi step

        kin = keys_ref[0]                          # (Skv, M) bf16
        vin = vals_ref[0]                          # (Skv, M) bf16

        pltpu.sync_copy(wk_hbm, w_tmp)             # Wk staged through shared temp
        k = jnp.dot(kin, w_tmp[...], preferred_element_type=jnp.float32) + bk_ref[...]
        k_cache[...] = k.astype(bf)

        pltpu.sync_copy(wv_hbm, w_tmp)             # Wv reuses the same temp
        v = jnp.dot(vin, w_tmp[...], preferred_element_type=jnp.float32) + bv_ref[...]
        v_cache[...] = v.astype(bf)

    # ---- Q projection for this query tile (contraction depth K = M) ---------
    x = seqs_ref[0]                                # (TQ, M) bf16
    q = jnp.dot(x, wq_vmem[...], preferred_element_type=jnp.float32) + bq_ref[...]
    q = (q * scale).astype(bf)                     # fold 1/sqrt(D) into q (smaller than scores)

    k = k_cache[...]                               # (Skv, M) bf16, projected & cached
    v = v_cache[...]

    # ---- Per-head attention: static lane-aligned slices, unrolled -----------
    # TODO(synk): flash-style Skv streaming for long contexts (see header).
    for h in range(H):
        sl = slice(h * D, (h + 1) * D)
        # scores = q_h @ k_h^T without materializing the transpose.
        s = lax.dot_general(q[:, sl], k[:, sl], (((1,), (1,)), ((), ())),
                            preferred_element_type=jnp.float32)     # (TQ, Skv) f32
        s = s - jnp.max(s, axis=-1, keepdims=True)
        p = jnp.exp(s)
        denom = jnp.sum(p, axis=-1, keepdims=True)                  # >= 1 after max-subtraction
        head = jnp.dot(p.astype(bf), v[:, sl],
                       preferred_element_type=jnp.float32)          # (TQ, D) f32
        # Deferred softmax normalization: scale the (TQ, D) head output instead
        # of the (TQ, Skv) probability matrix (EUP reciprocal, ~free slot).
        head = head * pl.reciprocal(denom, approx=True)
        o_scratch[:, sl] = head.astype(bf)                          # static lane offset write

    # ---- Merged output projection: one K = M matmul + single bias add -------
    # (On v5e a per-head K = D accumulation is equally good; v6e/v7x prefer the
    #  fused K = M form for the 256-deep MXU.)
    out = jnp.dot(o_scratch[...], wo_vmem[...],
                  preferred_element_type=jnp.float32) + bo_ref[...]
    out_ref[0] = out.astype(out_ref.dtype)                          # lane-dense bf16 store


def _vmem_capacity_bytes():
    try:
        cap = getattr(pltpu.get_tpu_info(), "vmem_capacity_bytes", None)
        if cap:
            return int(cap)
    except Exception:
        pass
    return 128 * (1 << 20)   # v5e / v6e default


def _footprint_bytes(TQ, Skv, M, H):
    bf, f32 = 2, 4
    D = M // H
    # Pallas-pipelined blocks (double-buffered).
    blocks = 2 * TQ * M * bf                 # seqs block
    blocks += 2 * 2 * Skv * M * bf           # keys + values blocks
    blocks += 2 * TQ * M * bf                # output block (bf16)
    blocks += 2 * 4 * M * f32                # biases
    # Persistent scratch (single-buffered).
    scratch = 3 * M * M * bf                 # Wq, Wo resident + Wk/Wv staging
    scratch += 2 * Skv * M * bf              # projected K/V caches
    scratch += TQ * M * bf                   # per-head output slab
    # f32 working set inside one step.
    work = TQ * M * f32                                              # q
    work += max(2 * Skv * M * f32,                                   # K/V projections (qi == 0)
                2 * TQ * Skv * f32 + TQ * D * f32)                   # scores/probs + head out
    return blocks + scratch + work


def _pick_query_tile(S, Skv, M, H, vmem_cap):
    # Generation-aware: budget scales with physical VMEM (64 MiB v7x, 128 MiB v5e/v6e).
    budget = int(0.6 * vmem_cap)
    for tq in (512, 256, 128):
        if S % tq == 0 and _footprint_bytes(tq, Skv, M, H) <= budget:
            return tq
    if S % 128 == 0:
        return 128
    return S  # small / irregular S: one tile


def _vmem_limit_bytes(TQ, Skv, M, H, vmem_cap):
    est = _footprint_bytes(TQ, Skv, M, H)
    limit = max(int(1.5 * est), 16 * (1 << 20))
    # Leave headroom below physical VMEM (~54 of 64 MiB on v7x, ~108 of 128 on v5e/v6e).
    return int(min(limit, int(0.85 * vmem_cap)))


def multihead_attention(seqs, keys, values, params, *, num_heads):
    """Pallas multi-head attention.

    seqs:   (N, S,   M)
    keys:   (N, Skv, M)
    values: (N, Skv, M)
    returns (N, S,   M) bfloat16
    """
    wq, wk, wv, wo, bq, bk, bv, bo = params
    N, S, M = seqs.shape
    _, Skv, _ = keys.shape
    H = num_heads
    D = M // H
    assert D * H == M
    # NOTE: keep head_dim a multiple of 128 for lane-aligned per-head slices and
    # full-depth score matmuls (D = 64 is correct but costs masked loads and a
    # shallow MXU contraction on v6e/v7x).

    bf = jnp.bfloat16
    seqs_b = seqs.astype(bf)
    keys_b = keys.astype(bf)
    values_b = values.astype(bf)
    wq_b, wk_b, wv_b, wo_b = (w.astype(bf) for w in (wq, wk, wv, wo))

    vmem_cap = _vmem_capacity_bytes()
    TQ = _pick_query_tile(S, Skv, M, H, vmem_cap)
    grid = (N, S // TQ)

    kernel = functools.partial(_mha_kernel, num_heads=H, head_dim=D)

    call = pl.pallas_call(
        kernel,
        out_shape=jax.ShapeDtypeStruct((N, S, M), jnp.bfloat16),
        grid_spec=pltpu.PrefetchScalarGridSpec(
            num_scalar_prefetch=0,
            grid=grid,
            in_specs=[
                pl.BlockSpec((1, TQ, M), lambda b, qi: (b, qi, 0)),   # seqs (query tile)
                pl.BlockSpec((1, Skv, M), lambda b, qi: (b, 0, 0)),   # keys (full Skv, per batch)
                pl.BlockSpec((1, Skv, M), lambda b, qi: (b, 0, 0)),   # values
                pl.BlockSpec(memory_space=pl.ANY),                    # Wq (HBM; staged manually)
                pl.BlockSpec(memory_space=pl.ANY),                    # Wk
                pl.BlockSpec(memory_space=pl.ANY),                    # Wv
                pl.BlockSpec(memory_space=pl.ANY),                    # Wo
                pl.BlockSpec((1, M), lambda b, qi: (0, 0)),           # bq
                pl.BlockSpec((1, M), lambda b, qi: (0, 0)),           # bk
                pl.BlockSpec((1, M), lambda b, qi: (0, 0)),           # bv
                pl.BlockSpec((1, M), lambda b, qi: (0, 0)),           # bo
            ],
            out_specs=pl.BlockSpec((1, TQ, M), lambda b, qi: (b, qi, 0)),
            scratch_shapes=[
                pltpu.VMEM((M, M), bf),      # Wq (resident, single-buffered)
                pltpu.VMEM((M, M), bf),      # Wo (resident, single-buffered)
                pltpu.VMEM((M, M), bf),      # Wk/Wv staging (reused)
                pltpu.VMEM((Skv, M), bf),    # projected K cache
                pltpu.VMEM((Skv, M), bf),    # projected V cache
                pltpu.VMEM((TQ, M), bf),     # concatenated per-head outputs
            ],
        ),
        compiler_params=pltpu.CompilerParams(
            # qi must be "arbitrary": the K/V cache lives across query tiles.
            dimension_semantics=("parallel", "arbitrary"),
            vmem_limit_bytes=_vmem_limit_bytes(TQ, Skv, M, H, vmem_cap),
        ),
    )
    return call(seqs_b, keys_b, values_b, wq_b, wk_b, wv_b, wo_b, bq, bk, bv, bo)


def multihead_attention_ref(seqs, keys, values, params, *, num_heads):
    """Pure-JAX f32 reference for correctness checking."""
    wq, wk, wv, wo, bq, bk, bv, bo = params
    N, S, M = seqs.shape
    Skv = keys.shape[1]
    H = num_heads
    D = M // H

    q = seqs @ wq + bq
    k = keys @ wk + bk
    v = values @ wv + bv

    q = q.reshape(N, S, H, D).transpose(0, 2, 1, 3)     # (N, H, S,   D)
    k = k.reshape(N, Skv, H, D).transpose(0, 2, 1, 3)   # (N, H, Skv, D)
    v = v.reshape(N, Skv, H, D).transpose(0, 2, 1, 3)   # (N, H, Skv, D)

    scores = jnp.einsum("nhsd,nhkd->nhsk", q, k) / jnp.sqrt(jnp.float32(D))
    attn = jax.nn.softmax(scores, axis=-1)
    o = jnp.einsum("nhsk,nhkd->nhsd", attn, v)          # (N, H, S, D)
    o = o.transpose(0, 2, 1, 3).reshape(N, S, M)
    return o @ wo + bo


def init_params(key, model_dim):
    M = model_dim
    ks = jax.random.split(key, 8)
    scale = 1.0 / jnp.sqrt(jnp.float32(M))
    wq = jax.random.uniform(ks[0], (M, M), jnp.float32, -scale, scale)
    wk = jax.random.uniform(ks[1], (M, M), jnp.float32, -scale, scale)
    wv = jax.random.uniform(ks[2], (M, M), jnp.float32, -scale, scale)
    wo = jax.random.uniform(ks[3], (M, M), jnp.float32, -scale, scale)
    bq = jax.random.uniform(ks[4], (1, M), jnp.float32, -scale, scale)
    bk = jax.random.uniform(ks[5], (1, M), jnp.float32, -scale, scale)
    bv = jax.random.uniform(ks[6], (1, M), jnp.float32, -scale, scale)
    bo = jax.random.uniform(ks[7], (1, M), jnp.float32, -scale, scale)
    return (wq, wk, wv, wo, bq, bk, bv, bo)


if __name__ == "__main__":
    # Small shapes consistent with the module's forward signature.
    # Head dim kept at 128 so per-head lane slices inside the kernel are
    # aligned to the 128-lane vreg tiling.
    N, S, Skv = 2, 8, 8
    model_dim, num_heads = 256, 2

    root = jax.random.PRNGKey(0)
    k_seq, k_key, k_val, k_par = jax.random.split(root, 4)

    seqs = jax.random.normal(k_seq, (N, S, model_dim), jnp.float32)
    keys = jax.random.normal(k_key, (N, Skv, model_dim), jnp.float32)
    values = jax.random.normal(k_val, (N, Skv, model_dim), jnp.float32)
    params = init_params(k_par, model_dim)

    fn = jax.jit(functools.partial(multihead_attention, num_heads=num_heads))
    out = fn(seqs, keys, values, params)
    out = jax.block_until_ready(out)

    ref = multihead_attention_ref(seqs, keys, values, params, num_heads=num_heads)
    assert out.shape == (N, S, model_dim)
    assert out.dtype == jnp.bfloat16
    # bf16 matmul datapath + bf16 output + approx reciprocal -> loose tolerance.
    assert jnp.allclose(out.astype(jnp.float32), ref, rtol=2e-2, atol=2e-2), \
        "mismatch vs reference"

    print("KERNEL_OK")
</pallas_src>

<mosaic_0001>
module attributes {stable_mosaic.version = 11 : i64} {
  func.func @_mha_kernel(%arg0: i32, %arg1: i32, %arg2: memref<1x8x256xbf16, #tpu.memory_space<vmem>>, %arg3: memref<1x8x256xbf16, #tpu.memory_space<vmem>>, %arg4: memref<1x8x256xbf16, #tpu.memory_space<vmem>>, %arg5: memref<256x256xbf16, #tpu.memory_space<any>>, %arg6: memref<256x256xbf16, #tpu.memory_space<any>>, %arg7: memref<256x256xbf16, #tpu.memory_space<any>>, %arg8: memref<256x256xbf16, #tpu.memory_space<any>>, %arg9: memref<1x256xf32, #tpu.memory_space<vmem>>, %arg10: memref<1x256xf32, #tpu.memory_space<vmem>>, %arg11: memref<1x256xf32, #tpu.memory_space<vmem>>, %arg12: memref<1x256xf32, #tpu.memory_space<vmem>>, %arg13: memref<1x8x256xbf16, #tpu.memory_space<vmem>>, %arg14: memref<256x256xbf16, #tpu.memory_space<vmem>>, %arg15: memref<256x256xbf16, #tpu.memory_space<vmem>>, %arg16: memref<256x256xbf16, #tpu.memory_space<vmem>>, %arg17: memref<8x256xbf16, #tpu.memory_space<vmem>>, %arg18: memref<8x256xbf16, #tpu.memory_space<vmem>>, %arg19: memref<8x256xbf16, #tpu.memory_space<vmem>>) attributes {dimension_semantics = [#tpu.dimension_semantics<parallel>, #tpu.dimension_semantics<arbitrary>], iteration_bounds = array<i64: 2, 1>, scalar_prefetch = 0 : i64, scratch_operands = 6 : i64, tpu.core_type = #tpu.core_type<tc>, window_params = [{transform_indices = @transform_0, window_bounds = array<i64: 1, 8, 256>}, {transform_indices = @transform_1, window_bounds = array<i64: 1, 8, 256>}, {transform_indices = @transform_2, window_bounds = array<i64: 1, 8, 256>}, {}, {}, {}, {}, {pipeline_mode = #tpu.pipeline_mode<synchronous>, transform_indices = @transform_7, window_bounds = array<i64: 1, 256>}, {pipeline_mode = #tpu.pipeline_mode<synchronous>, transform_indices = @transform_8, window_bounds = array<i64: 1, 256>}, {pipeline_mode = #tpu.pipeline_mode<synchronous>, transform_indices = @transform_9, window_bounds = array<i64: 1, 256>}, {pipeline_mode = #tpu.pipeline_mode<synchronous>, transform_indices = @transform_10, window_bounds = array<i64: 1, 256>}, {transform_indices = @transform_11, window_bounds = array<i64: 1, 8, 256>}]} {
    %c0_i32 = arith.constant 0 : i32
    %0 = arith.cmpi eq, %arg1, %c0_i32 : i32
    %1 = arith.extui %0 : i1 to i32
    %c0_i32_0 = arith.constant 0 : i32
    %2 = arith.cmpi ne, %1, %c0_i32_0 : i32
    scf.if %2 {
      "tpu.region"() ({
        %79 = tpu.sem_alloc : memref<!tpu.dma_semaphore, #tpu.memory_space<semaphore_mem>>
        tpu.enqueue_dma source(%arg5 : memref<256x256xbf16, #tpu.memory_space<any>>) target(%arg14 : memref<256x256xbf16, #tpu.memory_space<vmem>>) target_semaphore(%79 : memref<!tpu.dma_semaphore, #tpu.memory_space<semaphore_mem>>)
        tpu.wait_dma2 semaphore(%79 : memref<!tpu.dma_semaphore, #tpu.memory_space<semaphore_mem>>) src(%arg5 : memref<256x256xbf16, #tpu.memory_space<any>>) dst(%arg14 : memref<256x256xbf16, #tpu.memory_space<vmem>>)
        tpu.yield
      }) : () -> ()
      "tpu.region"() ({
        %79 = tpu.sem_alloc : memref<!tpu.dma_semaphore, #tpu.memory_space<semaphore_mem>>
        tpu.enqueue_dma source(%arg8 : memref<256x256xbf16, #tpu.memory_space<any>>) target(%arg15 : memref<256x256xbf16, #tpu.memory_space<vmem>>) target_semaphore(%79 : memref<!tpu.dma_semaphore, #tpu.memory_space<semaphore_mem>>)
        tpu.wait_dma2 semaphore(%79 : memref<!tpu.dma_semaphore, #tpu.memory_space<semaphore_mem>>) src(%arg8 : memref<256x256xbf16, #tpu.memory_space<any>>) dst(%arg15 : memref<256x256xbf16, #tpu.memory_space<vmem>>)
        tpu.yield
      }) : () -> ()
      %c0_33 = arith.constant 0 : index
      %c0_34 = arith.constant 0 : index
      %c0_35 = arith.constant 0 : index
      %61 = vector.load %arg3[%c0_33, %c0_34, %c0_35] : memref<1x8x256xbf16, #tpu.memory_space<vmem>>, vector<1x8x256xbf16>
      %62 = vector.shape_cast %61 : vector<1x8x256xbf16> to vector<8x256xbf16>
      %c0_36 = arith.constant 0 : index
      %c0_37 = arith.constant 0 : index
      %c0_38 = arith.constant 0 : index
      %63 = vector.load %arg4[%c0_36, %c0_37, %c0_38] : memref<1x8x256xbf16, #tpu.memory_space<vmem>>, vector<1x8x256xbf16>
      %64 = vector.shape_cast %63 : vector<1x8x256xbf16> to vector<8x256xbf16>
      "tpu.region"() ({
        %79 = tpu.sem_alloc : memref<!tpu.dma_semaphore, #tpu.memory_space<semaphore_mem>>
        tpu.enqueue_dma source(%arg6 : memref<256x256xbf16, #tpu.memory_space<any>>) target(%arg16 : memref<256x256xbf16, #tpu.memory_space<vmem>>) target_semaphore(%79 : memref<!tpu.dma_semaphore, #tpu.memory_space<semaphore_mem>>)
        tpu.wait_dma2 semaphore(%79 : memref<!tpu.dma_semaphore, #tpu.memory_space<semaphore_mem>>) src(%arg6 : memref<256x256xbf16, #tpu.memory_space<any>>) dst(%arg16 : memref<256x256xbf16, #tpu.memory_space<vmem>>)
        tpu.yield
      }) : () -> ()
      %c0_39 = arith.constant 0 : index
      %c0_40 = arith.constant 0 : index
      %65 = vector.load %arg16[%c0_39, %c0_40] : memref<256x256xbf16, #tpu.memory_space<vmem>>, vector<256x256xbf16>
      %cst_41 = arith.constant dense<0.000000e+00> : vector<8x256xf32>
      %66 = tpu.matmul %62, %65, %cst_41 {dimension_numbers = #tpu.dot_dimension_numbers<[1], [0], [0], [1], [0, 0, 1, 1], [], []>} : vector<8x256xbf16>, vector<256x256xbf16>, vector<8x256xf32> -> vector<8x256xf32>
      %c0_42 = arith.constant 0 : index
      %c0_43 = arith.constant 0 : index
      %67 = vector.load %arg10[%c0_42, %c0_43] : memref<1x256xf32, #tpu.memory_space<vmem>>, vector<1x256xf32>
      %68 = vector.broadcast %67 : vector<1x256xf32> to vector<8x256xf32>
      %69 = arith.addf %66, %68 : vector<8x256xf32>
      %70 = arith.truncf %69 : vector<8x256xf32> to vector<8x256xbf16>
      %c0_44 = arith.constant 0 : index
      %c0_45 = arith.constant 0 : index
      %71 = vector.load %arg17[%c0_44, %c0_45] : memref<8x256xbf16, #tpu.memory_space<vmem>>, vector<8x256xbf16>
      tpu.vector_store %arg17[%c0_44, %c0_45], %70 {strides = array<i32>} : memref<8x256xbf16, #tpu.memory_space<vmem>>, vector<8x256xbf16>,
      "tpu.region"() ({
        %79 = tpu.sem_alloc : memref<!tpu.dma_semaphore, #tpu.memory_space<semaphore_mem>>
        tpu.enqueue_dma source(%arg7 : memref<256x256xbf16, #tpu.memory_space<any>>) target(%arg16 : memref<256x256xbf16, #tpu.memory_space<vmem>>) target_semaphore(%79 : memref<!tpu.dma_semaphore, #tpu.memory_space<semaphore_mem>>)
        tpu.wait_dma2 semaphore(%79 : memref<!tpu.dma_semaphore, #tpu.memory_space<semaphore_mem>>) src(%arg7 : memref<256x256xbf16, #tpu.memory_space<any>>) dst(%arg16 : memref<256x256xbf16, #tpu.memory_space<vmem>>)
        tpu.yield
      }) : () -> ()
      %c0_46 = arith.constant 0 : index
      %c0_47 = arith.constant 0 : index
      %72 = vector.load %arg16[%c0_46, %c0_47] : memref<256x256xbf16, #tpu.memory_space<vmem>>, vector<256x256xbf16>
      %cst_48 = arith.constant dense<0.000000e+00> : vector<8x256xf32>
      %73 = tpu.matmul %64, %72, %cst_48 {dimension_numbers = #tpu.dot_dimension_numbers<[1], [0], [0], [1], [0, 0, 1, 1], [], []>} : vector<8x256xbf16>, vector<256x256xbf16>, vector<8x256xf32> -> vector<8x256xf32>
      %c0_49 = arith.constant 0 : index
      %c0_50 = arith.constant 0 : index
      %74 = vector.load %arg11[%c0_49, %c0_50] : memref<1x256xf32, #tpu.memory_space<vmem>>, vector<1x256xf32>
      %75 = vector.broadcast %74 : vector<1x256xf32> to vector<8x256xf32>
      %76 = arith.addf %73, %75 : vector<8x256xf32>
      %77 = arith.truncf %76 : vector<8x256xf32> to vector<8x256xbf16>
      %c0_51 = arith.constant 0 : index
      %c0_52 = arith.constant 0 : index
      %78 = vector.load %arg18[%c0_51, %c0_52] : memref<8x256xbf16, #tpu.memory_space<vmem>>, vector<8x256xbf16>
      tpu.vector_store %arg18[%c0_51, %c0_52], %77 {strides = array<i32>} : memref<8x256xbf16, #tpu.memory_space<vmem>>, vector<8x256xbf16>,
    } else {
    }
    %c0 = arith.constant 0 : index
    %c0_1 = arith.constant 0 : index
    %c0_2 = arith.constant 0 : index
    %3 = vector.load %arg2[%c0, %c0_1, %c0_2] : memref<1x8x256xbf16, #tpu.memory_space<vmem>>, vector<1x8x256xbf16>
    %4 = vector.shape_cast %3 : vector<1x8x256xbf16> to vector<8x256xbf16>
    %c0_3 = arith.constant 0 : index
    %c0_4 = arith.constant 0 : index
    %5 = vector.load %arg14[%c0_3, %c0_4] : memref<256x256xbf16, #tpu.memory_space<vmem>>, vector<256x256xbf16>
    %cst = arith.constant dense<0.000000e+00> : vector<8x256xf32>
    %6 = tpu.matmul %4, %5, %cst {dimension_numbers = #tpu.dot_dimension_numbers<[1], [0], [0], [1], [0, 0, 1, 1], [], []>} : vector<8x256xbf16>, vector<256x256xbf16>, vector<8x256xf32> -> vector<8x256xf32>
    %c0_5 = arith.constant 0 : index
    %c0_6 = arith.constant 0 : index
    %7 = vector.load %arg9[%c0_5, %c0_6] : memref<1x256xf32, #tpu.memory_space<vmem>>, vector<1x256xf32>
    %8 = vector.broadcast %7 : vector<1x256xf32> to vector<8x256xf32>
    %9 = arith.addf %6, %8 : vector<8x256xf32>
    %cst_7 = arith.constant 0.0883883461 : f32
    %10 = vector.broadcast %cst_7 : f32 to vector<8x256xf32>
    %11 = arith.mulf %9, %10 : vector<8x256xf32>
    %12 = arith.truncf %11 : vector<8x256xf32> to vector<8x256xbf16>
    %c0_8 = arith.constant 0 : index
    %c0_9 = arith.constant 0 : index
    %13 = vector.load %arg17[%c0_8, %c0_9] : memref<8x256xbf16, #tpu.memory_space<vmem>>, vector<8x256xbf16>
    %c0_10 = arith.constant 0 : index
    %c0_11 = arith.constant 0 : index
    %14 = vector.load %arg18[%c0_10, %c0_11] : memref<8x256xbf16, #tpu.memory_space<vmem>>, vector<8x256xbf16>
    %15 = vector.extract_strided_slice %12 {offsets = [0, 0], sizes = [8, 128], strides = [1, 1]} : vector<8x256xbf16> to vector<8x128xbf16>
    %16 = vector.extract_strided_slice %13 {offsets = [0, 0], sizes = [8, 128], strides = [1, 1]} : vector<8x256xbf16> to vector<8x128xbf16>
    %cst_12 = arith.constant dense<0.000000e+00> : vector<8x8xf32>
    %17 = tpu.matmul %15, %16, %cst_12 {dimension_numbers = #tpu.dot_dimension_numbers<[1], [1], [0], [0], [0, 0, 1, 0], [], []>} : vector<8x128xbf16>, vector<8x128xbf16>, vector<8x8xf32> -> vector<8x8xf32>
    %cst_13 = arith.constant dense<0xFF800000> : vector<8xf32>
    %18 = vector.multi_reduction <maximumf>, %17, %cst_13 [1] : vector<8x8xf32> to vector<8xf32>
    %19 = vector.shape_cast %18 : vector<8xf32> to vector<8x1xf32>
    %20 = vector.broadcast %19 : vector<8x1xf32> to vector<8x8xf32>
    %21 = arith.subf %17, %20 : vector<8x8xf32>
    %22 = math.exp %21 : vector<8x8xf32>
    %cst_14 = arith.constant dense<0.000000e+00> : vector<8xf32>
    %23 = vector.multi_reduction <add>, %22, %cst_14 [1] : vector<8x8xf32> to vector<8xf32>
    %24 = vector.shape_cast %23 : vector<8xf32> to vector<8x1xf32>
    %25 = arith.truncf %22 : vector<8x8xf32> to vector<8x8xbf16>
    %26 = vector.extract_strided_slice %14 {offsets = [0, 0], sizes = [8, 128], strides = [1, 1]} : vector<8x256xbf16> to vector<8x128xbf16>
    %cst_15 = arith.constant dense<0.000000e+00> : vector<8x128xf32>
    %27 = tpu.matmul %25, %26, %cst_15 {dimension_numbers = #tpu.dot_dimension_numbers<[1], [0], [0], [1], [0, 0, 1, 1], [], []>} : vector<8x8xbf16>, vector<8x128xbf16>, vector<8x128xf32> -> vector<8x128xf32>
    %28 = tpu.reciprocal %24 {approx = true} : vector<8x1xf32> -> vector<8x1xf32>
    %29 = vector.broadcast %28 : vector<8x1xf32> to vector<8x128xf32>
    %30 = arith.mulf %27, %29 : vector<8x128xf32>
    %31 = arith.truncf %30 : vector<8x128xf32> to vector<8x128xbf16>
    %c0_16 = arith.constant 0 : index
    %c0_17 = arith.constant 0 : index
    %32 = vector.load %arg19[%c0_16, %c0_17] : memref<8x256xbf16, #tpu.memory_space<vmem>>, vector<8x128xbf16>
    tpu.vector_store %arg19[%c0_16, %c0_17], %31 {strides = array<i32>} : memref<8x256xbf16, #tpu.memory_space<vmem>>, vector<8x128xbf16>,
    %33 = vector.extract_strided_slice %12 {offsets = [0, 128], sizes = [8, 128], strides = [1, 1]} : vector<8x256xbf16> to vector<8x128xbf16>
    %34 = vector.extract_strided_slice %13 {offsets = [0, 128], sizes = [8, 128], strides = [1, 1]} : vector<8x256xbf16> to vector<8x128xbf16>
    %cst_18 = arith.constant dense<0.000000e+00> : vector<8x8xf32>
    %35 = tpu.matmul %33, %34, %cst_18 {dimension_numbers = #tpu.dot_dimension_numbers<[1], [1], [0], [0], [0, 0, 1, 0], [], []>} : vector<8x128xbf16>, vector<8x128xbf16>, vector<8x8xf32> -> vector<8x8xf32>
    %cst_19 = arith.constant dense<0xFF800000> : vector<8xf32>
    %36 = vector.multi_reduction <maximumf>, %35, %cst_19 [1] : vector<8x8xf32> to vector<8xf32>
    %37 = vector.shape_cast %36 : vector<8xf32> to vector<8x1xf32>
    %38 = vector.broadcast %37 : vector<8x1xf32> to vector<8x8xf32>
    %39 = arith.subf %35, %38 : vector<8x8xf32>
    %40 = math.exp %39 : vector<8x8xf32>
    %cst_20 = arith.constant dense<0.000000e+00> : vector<8xf32>
    %41 = vector.multi_reduction <add>, %40, %cst_20 [1] : vector<8x8xf32> to vector<8xf32>
    %42 = vector.shape_cast %41 : vector<8xf32> to vector<8x1xf32>
    %43 = arith.truncf %40 : vector<8x8xf32> to vector<8x8xbf16>
    %44 = vector.extract_strided_slice %14 {offsets = [0, 128], sizes = [8, 128], strides = [1, 1]} : vector<8x256xbf16> to vector<8x128xbf16>
    %cst_21 = arith.constant dense<0.000000e+00> : vector<8x128xf32>
    %45 = tpu.matmul %43, %44, %cst_21 {dimension_numbers = #tpu.dot_dimension_numbers<[1], [0], [0], [1], [0, 0, 1, 1], [], []>} : vector<8x8xbf16>, vector<8x128xbf16>, vector<8x128xf32> -> vector<8x128xf32>
    %46 = tpu.reciprocal %42 {approx = true} : vector<8x1xf32> -> vector<8x1xf32>
    %47 = vector.broadcast %46 : vector<8x1xf32> to vector<8x128xf32>
    %48 = arith.mulf %45, %47 : vector<8x128xf32>
    %49 = arith.truncf %48 : vector<8x128xf32> to vector<8x128xbf16>
    %c0_22 = arith.constant 0 : index
    %c128 = arith.constant 128 : index
    %50 = vector.load %arg19[%c0_22, %c128] : memref<8x256xbf16, #tpu.memory_space<vmem>>, vector<8x128xbf16>
    tpu.vector_store %arg19[%c0_22, %c128], %49 {strides = array<i32>} : memref<8x256xbf16, #tpu.memory_space<vmem>>, vector<8x128xbf16>,
    %c0_23 = arith.constant 0 : index
    %c0_24 = arith.constant 0 : index
    %51 = vector.load %arg19[%c0_23, %c0_24] : memref<8x256xbf16, #tpu.memory_space<vmem>>, vector<8x256xbf16>
    %c0_25 = arith.constant 0 : index
    %c0_26 = arith.constant 0 : index
    %52 = vector.load %arg15[%c0_25, %c0_26] : memref<256x256xbf16, #tpu.memory_space<vmem>>, vector<256x256xbf16>
    %cst_27 = arith.constant dense<0.000000e+00> : vector<8x256xf32>
    %53 = tpu.matmul %51, %52, %cst_27 {dimension_numbers = #tpu.dot_dimension_numbers<[1], [0], [0], [1], [0, 0, 1, 1], [], []>} : vector<8x256xbf16>, vector<256x256xbf16>, vector<8x256xf32> -> vector<8x256xf32>
    %c0_28 = arith.constant 0 : index
    %c0_29 = arith.constant 0 : index
    %54 = vector.load %arg12[%c0_28, %c0_29] : memref<1x256xf32, #tpu.memory_space<vmem>>, vector<1x256xf32>
    %55 = vector.broadcast %54 : vector<1x256xf32> to vector<8x256xf32>
    %56 = arith.addf %53, %55 : vector<8x256xf32>
    %57 = arith.truncf %56 : vector<8x256xf32> to vector<8x256xbf16>
    %c0_30 = arith.constant 0 : index
    %c0_31 = arith.constant 0 : index
    %c0_32 = arith.constant 0 : index
    %58 = vector.load %arg13[%c0_30, %c0_31, %c0_32] : memref<1x8x256xbf16, #tpu.memory_space<vmem>>, vector<1x8x256xbf16>
    %59 = vector.shape_cast %58 : vector<1x8x256xbf16> to vector<8x256xbf16>
    %60 = vector.shape_cast %57 : vector<8x256xbf16> to vector<1x8x256xbf16>
    tpu.vector_store %arg13[%c0_30, %c0_31, %c0_32], %60 {strides = array<i32>} : memref<1x8x256xbf16, #tpu.memory_space<vmem>>, vector<1x8x256xbf16>,
    return
  }
  func.func @transform_0(%arg0: i32, %arg1: i32) -> (i32, i32, i32) {
    %c0_i32 = arith.constant 0 : i32
    %c0_i32_0 = arith.constant 0 : i32
    return %arg0, %arg1, %c0_i32 : i32, i32, i32
  }
  func.func @transform_1(%arg0: i32, %arg1: i32) -> (i32, i32, i32) {
    %c0_i32 = arith.constant 0 : i32
    %c0_i32_0 = arith.constant 0 : i32
    %c0_i32_1 = arith.constant 0 : i32
    return %arg0, %c0_i32, %c0_i32_0 : i32, i32, i32
  }
  func.func @transform_2(%arg0: i32, %arg1: i32) -> (i32, i32, i32) {
    %c0_i32 = arith.constant 0 : i32
    %c0_i32_0 = arith.constant 0 : i32
    %c0_i32_1 = arith.constant 0 : i32
    return %arg0, %c0_i32, %c0_i32_0 : i32, i32, i32
  }
  func.func @transform_7(%arg0: i32, %arg1: i32) -> (i32, i32) {
    %c0_i32 = arith.constant 0 : i32
    %c0_i32_0 = arith.constant 0 : i32
    %c0_i32_1 = arith.constant 0 : i32
    return %c0_i32, %c0_i32_0 : i32, i32
  }
  func.func @transform_8(%arg0: i32, %arg1: i32) -> (i32, i32) {
    %c0_i32 = arith.constant 0 : i32
    %c0_i32_0 = arith.constant 0 : i32
    %c0_i32_1 = arith.constant 0 : i32
    return %c0_i32, %c0_i32_0 : i32, i32
  }
  func.func @transform_9(%arg0: i32, %arg1: i32) -> (i32, i32) {
    %c0_i32 = arith.constant 0 : i32
    %c0_i32_0 = arith.constant 0 : i32
    %c0_i32_1 = arith.constant 0 : i32
    return %c0_i32, %c0_i32_0 : i32, i32
  }
  func.func @transform_10(%arg0: i32, %arg1: i32) -> (i32, i32) {
    %c0_i32 = arith.constant 0 : i32
    %c0_i32_0 = arith.constant 0 : i32
    %c0_i32_1 = arith.constant 0 : i32
    return %c0_i32, %c0_i32_0 : i32, i32
  }
  func.func @transform_11(%arg0: i32, %arg1: i32) -> (i32, i32, i32) {
    %c0_i32 = arith.constant 0 : i32
    %c0_i32_0 = arith.constant 0 : i32
    return %arg0, %arg1, %c0_i32 : i32, i32, i32
  }
}

</mosaic_0001>

<bundles_post_ra>
// kernel: multihead_attention.1
= control target key start
LH: loop header
LB: loop body
LE: loop exit
PB: predicated region body
PF: predicated region fallthrough
CT: control target
= control target key end

     0   :  { %16 = vsyncpa [#allocation9], 0  ;;  %s3398_s0 = inlined_call_operand.vmem [shape: bf16[2,8,256], index: 0, kind: input, shape index: {}]   ;;  %s3399_s1 = inlined_call_operand.vmem [shape: bf16[2,8,256], index: 1, kind: input, shape index: {}]   ;;  %s3400_s2 = inlined_call_operand.vmem [shape: bf16[2,8,256], index: 2, kind: input, shape index: {}]   ;;  %s3401_s3 = inlined_call_operand.vmem [shape: bf16[256,256], index: 3, kind: input, shape index: {}]   ;;  %s3402_s4 = inlined_call_operand.vmem [shape: bf16[256,256], index: 4, kind: input, shape index: {}]   ;;  %s3403_s5 = inlined_call_operand.vmem [shape: bf16[256,256], index: 5, kind: input, shape index: {}]   ;;  %s3404_s6 = inlined_call_operand.vmem [shape: bf16[256,256], index: 6, kind: input, shape index: {}]   ;;  %s3405_s7 = inlined_call_operand.vmem [shape: f32[1,256], index: 7, kind: input, shape index: {}]   ;;  %s3406_s8 = inlined_call_operand.vmem [shape: f32[1,256], index: 8, kind: input, shape index: {}]   ;;  %s3407_s9 = inlined_call_operand.vmem [shape: f32[1,256], index: 9, kind: input, shape index: {}]   ;;  %s3408_s10 = inlined_call_operand.vmem [shape: f32[1,256], index: 10, kind: input, shape index: {}]   ;;  %s3409_s11 = inlined_call_operand.hbm [shape: bf16[2,8,256], index: 11, kind: output, shape index: {}]  }
   0x1   :  { %18 = vsyncpa [#allocation9 + $0x1], 0  ;;  %s2850_s17 = smov 0   ;;  %s2852_s18 = smov 0  }
   0x2   :  { %s2854_s19 = smov 0   ;;  %s2856_s20 = smov 0  }
   0x3   :  { %s2858_s21 = smov 0   ;;  %s2860_s22 = smov 0  }
   0x4 LB: > { %3418 = sst [smem:[#allocation23_spill]] %s2768_s17  ;;  %s1976_s23 = sadd.s32 4294967295, %s2788_s22   ;;  %s2788_s22 = sphi %s2860_s22, %s24_s22   ;;  %s2784_s21 = sphi %s2858_s21, %s3437_s21   ;;  %s2780_s20 = sphi %s2856_s20, %s3433_s20   ;;  %s2776_s19 = sphi %s2854_s19, %s3432_s19   ;;  %s2772_s18 = sphi %s2852_s18, %s3436_s18   ;;  %s2768_s17 = sphi %s2850_s17, %s3435_s17  }
   0x5   : > { %3419 = sst [smem:[#allocation24_spill]] %s2776_s19  ;;  %s1977_s24 = sadd.s32 4294967294, %s2788_s22  }
   0x6   : > { %3420 = sst [smem:[#allocation25_spill]] %s2784_s21  ;;  %s36_s25 = sadd.s32 1, %s2784_s21 }
   0x7   : > { %3421 = sst [smem:[#allocation26_spill]] %s2788_s22  ;;  %s209_s26 = sadd.s32 1, %s2776_s19 }
   0x8   : > { %p38_p0 = scmp.ge.s32.totalorder %s36_s25, 2  ;;  %p219_p1 = scmp.ne.s32.totalorder %s2776_s19, %s2772_s18 }
   0x9   : > { %p220_p2 = scmp.eq.s32.totalorder %s1976_s23, 1  ;;  %p225_p3 = scmp.ne.s32.totalorder %s2772_s18, %s2768_s17 }
   0xa   : > { %s3439_s25 = smov (%p38_p0, %s36_s25), 0  ;;  %p226_p5 = scmp.eq.s32.totalorder %s1977_s24, 1 }
   0xb   : > { %3422 = sst [smem:[#allocation27_spill]] %s3439_s25  ;;  %p2890_p4 = por %p220_p2, %p219_p1 }
   0xc   : > { %s204_s28 = ssub.s32 %s2784_s21, %s3439_s25  ;;  %p1980_p6 = scmp.ge.s32.totalorder %s2788_s22, 1 }
   0xd   : > { %p207_p7 = scmp.eq.s32.totalorder %s204_s28, 0  ;;  %p2897_p8 = por %p226_p5, %p225_p3 }
   0xe   : > { %p284_p9 = scmp.lt.s32.totalorder %s2788_s22, 3 }
   0xf   : > { %s3424_s29 = scalar_select %p2897_p8, 1, 0 }
  0x10   : > { %s2903_s30 = scalar_select %p207_p7, %s2776_s19, %s209_s26  }
  0x11   : > { %3425 = sst [smem:[#allocation28_spill]] %s3424_s29  ;;  %p285_p10 = pnand %p1980_p6, %p284_p9 }
  0x12   : > { %3426 = sst [smem:[#allocation29_spill]] %s2903_s30  ;;  %s3412_s12 = sand.u32 (!%p285_p10), 1, %s2772_s18  }
  0x13   : > { %288 = sbr.rel (%p285_p10) target bundleno = 1121 (0x461), region = 48  ;;  %p330_p11 = scmp.lt.s32.totalorder (!%p285_p10), %s2780_s20, 1 }
  0x14   : > { %s2909_s13 = sshll.u32 (!%p285_p10), %s3412_s12, 3 }
  0x15   : > { %s329_s19 = scalar_lea.vmem (!%p285_p10), [#allocation8], %s2909_s13 }
  0x18   : > { %s331_s14 = scalar_select %p330_p11, %s2780_s20, 1 }
  0x1a   : > { %s2912_s15 = sshll.u32 %s331_s14, 3 }
  0x1b   : > { %s338_s24 = scalar_lea.vmem %s3398_s0, %s2912_s15  ;;  %s343_s25 = scalar_lea.vmem %s3399_s1, %s2912_s15 }
  0x1c   : > { %s348_s12 = scalar_lea.vmem %s3400_s2, %s2912_s15 }
  0x1d   : > { %v364_v0 = vld [vmem:[%s3401_s3] sm:$0xff]  ;;  %v366_v1 = vld [vmem:[%s3401_s3 + $0x8] sm:$0xff]  ;;  %v368_v2 = vld [vmem:[%s3401_s3 + $0x10] sm:$0xff] }
  0x1e   : > { %365 = vst [vmem:[#allocation2] sm:$0xff] %v364_v0  ;;  %v370_v3 = vld [vmem:[%s3401_s3 + $0x18] sm:$0xff]  ;;  %v372_v4 = vld [vmem:[%s3401_s3 + $0x20] sm:$0xff]  ;;  %v374_v5 = vld [vmem:[%s3401_s3 + $0x28] sm:$0xff] }
  0x1f   : > { %367 = vst [vmem:[#allocation2 + $0x8] sm:$0xff] %v366_v1  ;;  %v376_v6 = vld [vmem:[%s3401_s3 + $0x30] sm:$0xff]  ;;  %v378_v7 = vld [vmem:[%s3401_s3 + $0x38] sm:$0xff]  ;;  %v380_v8 = vld [vmem:[%s3401_s3 + $0x40] sm:$0xff] }
  0x20   : > { %369 = vst [vmem:[#allocation2 + $0x10] sm:$0xff] %v368_v2  ;;  %v382_v9 = vld [vmem:[%s3401_s3 + $0x48] sm:$0xff]  ;;  %v384_v10 = vld [vmem:[%s3401_s3 + $0x50] sm:$0xff]  ;;  %v386_v11 = vld [vmem:[%s3401_s3 + $0x58] sm:$0xff] }
  0x21   : > { %371 = vst [vmem:[#allocation2 + $0x18] sm:$0xff] %v370_v3  ;;  %v388_v12 = vld [vmem:[%s3401_s3 + $0x60] sm:$0xff]  ;;  %v390_v13 = vld [vmem:[%s3401_s3 + $0x68] sm:$0xff]  ;;  %v392_v14 = vld [vmem:[%s3401_s3 + $0x70] sm:$0xff] }
  0x22   : > { %373 = vst [vmem:[#allocation2 + $0x20] sm:$0xff] %v372_v4  ;;  %v394_v15 = vld [vmem:[%s3401_s3 + $0x78] sm:$0xff]  ;;  %v396_v16 = vld [vmem:[%s3401_s3 + $0x80] sm:$0xff]  ;;  %v398_v17 = vld [vmem:[%s3401_s3 + $0x88] sm:$0xff] }
  0x23   : > { %375 = vst [vmem:[#allocation2 + $0x28] sm:$0xff] %v374_v5  ;;  %v400_v18 = vld [vmem:[%s3401_s3 + $0x90] sm:$0xff]  ;;  %v402_v19 = vld [vmem:[%s3401_s3 + $0x98] sm:$0xff]  ;;  %v404_v20 = vld [vmem:[%s3401_s3 + $0xa0] sm:$0xff] }
  0x24   : > { %377 = vst [vmem:[#allocation2 + $0x30] sm:$0xff] %v376_v6  ;;  %v406_v21 = vld [vmem:[%s3401_s3 + $0xa8] sm:$0xff]  ;;  %v408_v22 = vld [vmem:[%s3401_s3 + $0xb0] sm:$0xff]  ;;  %v410_v23 = vld [vmem:[%s3401_s3 + $0xb8] sm:$0xff] }
  0x25   : > { %379 = vst [vmem:[#allocation2 + $0x38] sm:$0xff] %v378_v7  ;;  %v412_v24 = vld [vmem:[%s3401_s3 + $0xc0] sm:$0xff]  ;;  %v414_v25 = vld [vmem:[%s3401_s3 + $0xc8] sm:$0xff]  ;;  %v416_v26 = vld [vmem:[%s3401_s3 + $0xd0] sm:$0xff] }
  0x26   : > { %381 = vst [vmem:[#allocation2 + $0x40] sm:$0xff] %v380_v8  ;;  %v418_v27 = vld [vmem:[%s3401_s3 + $0xd8] sm:$0xff]  ;;  %v420_v28 = vld [vmem:[%s3401_s3 + $0xe0] sm:$0xff]  ;;  %v422_v29 = vld [vmem:[%s3401_s3 + $0xe8] sm:$0xff] }
  0x27   : > { %383 = vst [vmem:[#allocation2 + $0x48] sm:$0xff] %v382_v9  ;;  %v424_v30 = vld [vmem:[%s3401_s3 + $0xf0] sm:$0xff]  ;;  %v426_v31 = vld [vmem:[%s3401_s3 + $0xf8] sm:$0xff] }
  0x28   : > { %385 = vst [vmem:[#allocation2 + $0x50] sm:$0xff] %v384_v10 }
  0x29   : > { %387 = vst [vmem:[#allocation2 + $0x58] sm:$0xff] %v386_v11 }
  0x2a   : > { %389 = vst [vmem:[#allocation2 + $0x60] sm:$0xff] %v388_v12 }
  0x2b   : > { %391 = vst [vmem:[#allocation2 + $0x68] sm:$0xff] %v390_v13 }
  0x2c   : > { %393 = vst [vmem:[#allocation2 + $0x70] sm:$0xff] %v392_v14 }
  0x2d   : > { %395 = vst [vmem:[#allocation2 + $0x78] sm:$0xff] %v394_v15 }
  0x2e   : > { %397 = vst [vmem:[#allocation2 + $0x80] sm:$0xff] %v396_v16 }
  0x2f   : > { %399 = vst [vmem:[#allocation2 + $0x88] sm:$0xff] %v398_v17 }
  0x30   : > { %401 = vst [vmem:[#allocation2 + $0x90] sm:$0xff] %v400_v18 }
  0x31   : > { %403 = vst [vmem:[#allocation2 + $0x98] sm:$0xff] %v402_v19 }
  0x32   : > { %405 = vst [vmem:[#allocation2 + $0xa0] sm:$0xff] %v404_v20 }
  0x33   : > { %407 = vst [vmem:[#allocation2 + $0xa8] sm:$0xff] %v406_v21 }
  0x34   : > { %409 = vst [vmem:[#allocation2 + $0xb0] sm:$0xff] %v408_v22 }
  0x35   : > { %411 = vst [vmem:[#allocation2 + $0xb8] sm:$0xff] %v410_v23 }
  0x36   : > { %413 = vst [vmem:[#allocation2 + $0xc0] sm:$0xff] %v412_v24 }
  0x37   : > { %415 = vst [vmem:[#allocation2 + $0xc8] sm:$0xff] %v414_v25 }
  0x38   : > { %417 = vst [vmem:[#allocation2 + $0xd0] sm:$0xff] %v416_v26 }
  0x39   : > { %419 = vst [vmem:[#allocation2 + $0xd8] sm:$0xff] %v418_v27 }
  0x3a   : > { %421 = vst [vmem:[#allocation2 + $0xe0] sm:$0xff] %v420_v28 }
  0x3b   : > { %423 = vst [vmem:[#allocation2 + $0xe8] sm:$0xff] %v422_v29 }
  0x3c   : > { %425 = vst [vmem:[#allocation2 + $0xf0] sm:$0xff] %v424_v30 }
  0x3d   : > { %427 = vst [vmem:[#allocation2 + $0xf8] sm:$0xff] %v426_v31 }
  0x3e   : > { %433 = vsyncadd [#allocation10], 4096 }
  0x3f   : > { %2754 = dma.done.wait [#allocation10], 4096 }
  0x40   : > { %2755 = vsyncadd [#allocation10], 4294963200 }
  0x41   : > { %v448_v32 = vld [vmem:[%s3404_s6] sm:$0xff]  ;;  %v450_v33 = vld [vmem:[%s3404_s6 + $0x8] sm:$0xff]  ;;  %v452_v34 = vld [vmem:[%s3404_s6 + $0x10] sm:$0xff] }
  0x42   : > { %449 = vst [vmem:[#allocation3] sm:$0xff] %v448_v32  ;;  %v454_v35 = vld [vmem:[%s3404_s6 + $0x18] sm:$0xff]  ;;  %v456_v36 = vld [vmem:[%s3404_s6 + $0x20] sm:$0xff]  ;;  %v458_v37 = vld [vmem:[%s3404_s6 + $0x28] sm:$0xff] }
  0x43   : > { %451 = vst [vmem:[#allocation3 + $0x8] sm:$0xff] %v450_v33  ;;  %v460_v38 = vld [vmem:[%s3404_s6 + $0x30] sm:$0xff]  ;;  %v462_v39 = vld [vmem:[%s3404_s6 + $0x38] sm:$0xff]  ;;  %v464_v40 = vld [vmem:[%s3404_s6 + $0x40] sm:$0xff] }
  0x44   : > { %453 = vst [vmem:[#allocation3 + $0x10] sm:$0xff] %v452_v34  ;;  %v466_v41 = vld [vmem:[%s3404_s6 + $0x48] sm:$0xff]  ;;  %v468_v42 = vld [vmem:[%s3404_s6 + $0x50] sm:$0xff]  ;;  %v470_v43 = vld [vmem:[%s3404_s6 + $0x58] sm:$0xff] }
  0x45   : > { %455 = vst [vmem:[#allocation3 + $0x18] sm:$0xff] %v454_v35  ;;  %v472_v44 = vld [vmem:[%s3404_s6 + $0x60] sm:$0xff]  ;;  %v474_v45 = vld [vmem:[%s3404_s6 + $0x68] sm:$0xff]  ;;  %v476_v46 = vld [vmem:[%s3404_s6 + $0x70] sm:$0xff] }
  0x46   : > { %457 = vst [vmem:[#allocation3 + $0x20] sm:$0xff] %v456_v36  ;;  %v478_v47 = vld [vmem:[%s3404_s6 + $0x78] sm:$0xff]  ;;  %v480_v48 = vld [vmem:[%s3404_s6 + $0x80] sm:$0xff]  ;;  %v482_v49 = vld [vmem:[%s3404_s6 + $0x88] sm:$0xff] }
  0x47   : > { %459 = vst [vmem:[#allocation3 + $0x28] sm:$0xff] %v458_v37  ;;  %v484_v50 = vld [vmem:[%s3404_s6 + $0x90] sm:$0xff]  ;;  %v486_v51 = vld [vmem:[%s3404_s6 + $0x98] sm:$0xff]  ;;  %v488_v52 = vld [vmem:[%s3404_s6 + $0xa0] sm:$0xff] }
  0x48   : > { %461 = vst [vmem:[#allocation3 + $0x30] sm:$0xff] %v460_v38  ;;  %v490_v53 = vld [vmem:[%s3404_s6 + $0xa8] sm:$0xff]  ;;  %v492_v54 = vld [vmem:[%s3404_s6 + $0xb0] sm:$0xff]  ;;  %v494_v55 = vld [vmem:[%s3404_s6 + $0xb8] sm:$0xff] }
  0x49   : > { %463 = vst [vmem:[#allocation3 + $0x38] sm:$0xff] %v462_v39  ;;  %v496_v56 = vld [vmem:[%s3404_s6 + $0xc0] sm:$0xff]  ;;  %v498_v57 = vld [vmem:[%s3404_s6 + $0xc8] sm:$0xff]  ;;  %v500_v58 = vld [vmem:[%s3404_s6 + $0xd0] sm:$0xff] }
  0x4a   : > { %465 = vst [vmem:[#allocation3 + $0x40] sm:$0xff] %v464_v40  ;;  %v502_v59 = vld [vmem:[%s3404_s6 + $0xd8] sm:$0xff]  ;;  %v504_v60 = vld [vmem:[%s3404_s6 + $0xe0] sm:$0xff]  ;;  %v506_v61 = vld [vmem:[%s3404_s6 + $0xe8] sm:$0xff] }
  0x4b   : > { %467 = vst [vmem:[#allocation3 + $0x48] sm:$0xff] %v466_v41  ;;  %v508_v62 = vld [vmem:[%s3404_s6 + $0xf0] sm:$0xff]  ;;  %v510_v63 = vld [vmem:[%s3404_s6 + $0xf8] sm:$0xff] }
  0x4c   : > { %469 = vst [vmem:[#allocation3 + $0x50] sm:$0xff] %v468_v42 }
  0x4d   : > { %471 = vst [vmem:[#allocation3 + $0x58] sm:$0xff] %v470_v43 }
  0x4e   : > { %473 = vst [vmem:[#allocation3 + $0x60] sm:$0xff] %v472_v44 }
  0x4f   : > { %475 = vst [vmem:[#allocation3 + $0x68] sm:$0xff] %v474_v45 }
  0x50   : > { %477 = vst [vmem:[#allocation3 + $0x70] sm:$0xff] %v476_v46 }
  0x51   : > { %479 = vst [vmem:[#allocation3 + $0x78] sm:$0xff] %v478_v47 }
  0x52   : > { %481 = vst [vmem:[#allocation3 + $0x80] sm:$0xff] %v480_v48 }
  0x53   : > { %483 = vst [vmem:[#allocation3 + $0x88] sm:$0xff] %v482_v49 }
  0x54   : > { %485 = vst [vmem:[#allocation3 + $0x90] sm:$0xff] %v484_v50 }
  0x55   : > { %487 = vst [vmem:[#allocation3 + $0x98] sm:$0xff] %v486_v51 }
  0x56   : > { %489 = vst [vmem:[#allocation3 + $0xa0] sm:$0xff] %v488_v52 }
  0x57   : > { %491 = vst [vmem:[#allocation3 + $0xa8] sm:$0xff] %v490_v53 }
  0x58   : > { %493 = vst [vmem:[#allocation3 + $0xb0] sm:$0xff] %v492_v54 }
  0x59   : > { %495 = vst [vmem:[#allocation3 + $0xb8] sm:$0xff] %v494_v55 }
  0x5a   : > { %497 = vst [vmem:[#allocation3 + $0xc0] sm:$0xff] %v496_v56 }
  0x5b   : > { %499 = vst [vmem:[#allocation3 + $0xc8] sm:$0xff] %v498_v57 }
  0x5c   : > { %501 = vst [vmem:[#allocation3 + $0xd0] sm:$0xff] %v500_v58 }
  0x5d   : > { %503 = vst [vmem:[#allocation3 + $0xd8] sm:$0xff] %v502_v59 }
  0x5e   : > { %505 = vst [vmem:[#allocation3 + $0xe0] sm:$0xff] %v504_v60 }
  0x5f   : > { %507 = vst [vmem:[#allocation3 + $0xe8] sm:$0xff] %v506_v61 }
  0x60   : > { %509 = vst [vmem:[#allocation3 + $0xf0] sm:$0xff] %v508_v62 }
  0x61   : > { %511 = vst [vmem:[#allocation3 + $0xf8] sm:$0xff] %v510_v63 }
  0x62   : > { %517 = vsyncadd [#allocation12], 4096 }
  0x63   : > { %2756 = dma.done.wait [#allocation12], 4096 }
  0x64   : > { %2757 = vsyncadd [#allocation12], 4294963200  ;;  %v3124_v0 = vld [vmem:[%s343_s25] sm:$0xff] }
  0x65   : > { %v3131_v1 = vld [vmem:[%s348_s12] sm:$0xff] }
  0x66   : > { %v534_v2 = vld [vmem:[%s3402_s4] sm:$0xff]  ;;  %v536_v3 = vld [vmem:[%s3402_s4 + $0x8] sm:$0xff]  ;;  %v538_v4 = vld [vmem:[%s3402_s4 + $0x10] sm:$0xff] }
  0x67   : > { %535 = vst [vmem:[#allocation4] sm:$0xff] %v534_v2  ;;  %v540_v5 = vld [vmem:[%s3402_s4 + $0x18] sm:$0xff]  ;;  %v542_v6 = vld [vmem:[%s3402_s4 + $0x20] sm:$0xff]  ;;  %v544_v7 = vld [vmem:[%s3402_s4 + $0x28] sm:$0xff] }
  0x68   : > { %537 = vst [vmem:[#allocation4 + $0x8] sm:$0xff] %v536_v3  ;;  %v546_v8 = vld [vmem:[%s3402_s4 + $0x30] sm:$0xff]  ;;  %v548_v9 = vld [vmem:[%s3402_s4 + $0x38] sm:$0xff]  ;;  %v550_v10 = vld [vmem:[%s3402_s4 + $0x40] sm:$0xff] }
  0x69   : > { %539 = vst [vmem:[#allocation4 + $0x10] sm:$0xff] %v538_v4  ;;  %v552_v11 = vld [vmem:[%s3402_s4 + $0x48] sm:$0xff]  ;;  %v554_v12 = vld [vmem:[%s3402_s4 + $0x50] sm:$0xff]  ;;  %v556_v13 = vld [vmem:[%s3402_s4 + $0x58] sm:$0xff] }
  0x6a   : > { %541 = vst [vmem:[#allocation4 + $0x18] sm:$0xff] %v540_v5  ;;  %v558_v14 = vld [vmem:[%s3402_s4 + $0x60] sm:$0xff]  ;;  %v560_v15 = vld [vmem:[%s3402_s4 + $0x68] sm:$0xff]  ;;  %v562_v16 = vld [vmem:[%s3402_s4 + $0x70] sm:$0xff] }
  0x6b   : > { %543 = vst [vmem:[#allocation4 + $0x20] sm:$0xff] %v542_v6  ;;  %v564_v17 = vld [vmem:[%s3402_s4 + $0x78] sm:$0xff]  ;;  %v566_v18 = vld [vmem:[%s3402_s4 + $0x80] sm:$0xff]  ;;  %v568_v19 = vld [vmem:[%s3402_s4 + $0x88] sm:$0xff] }
  0x6c   : > { %545 = vst [vmem:[#allocation4 + $0x28] sm:$0xff] %v544_v7  ;;  %v570_v20 = vld [vmem:[%s3402_s4 + $0x90] sm:$0xff]  ;;  %v572_v21 = vld [vmem:[%s3402_s4 + $0x98] sm:$0xff]  ;;  %v574_v22 = vld [vmem:[%s3402_s4 + $0xa0] sm:$0xff] }
  0x6d   : > { %547 = vst [vmem:[#allocation4 + $0x30] sm:$0xff] %v546_v8  ;;  %v576_v23 = vld [vmem:[%s3402_s4 + $0xa8] sm:$0xff]  ;;  %v578_v24 = vld [vmem:[%s3402_s4 + $0xb0] sm:$0xff]  ;;  %v580_v25 = vld [vmem:[%s3402_s4 + $0xb8] sm:$0xff] }
  0x6e   : > { %549 = vst [vmem:[#allocation4 + $0x38] sm:$0xff] %v548_v9  ;;  %v582_v26 = vld [vmem:[%s3402_s4 + $0xc0] sm:$0xff]  ;;  %v584_v27 = vld [vmem:[%s3402_s4 + $0xc8] sm:$0xff]  ;;  %v586_v28 = vld [vmem:[%s3402_s4 + $0xd0] sm:$0xff] }
  0x6f   : > { %551 = vst [vmem:[#allocation4 + $0x40] sm:$0xff] %v550_v10  ;;  %v588_v29 = vld [vmem:[%s3402_s4 + $0xd8] sm:$0xff]  ;;  %v590_v30 = vld [vmem:[%s3402_s4 + $0xe0] sm:$0xff]  ;;  %v592_v31 = vld [vmem:[%s3402_s4 + $0xe8] sm:$0xff] }
  0x70   : > { %553 = vst [vmem:[#allocation4 + $0x48] sm:$0xff] %v552_v11  ;;  %v594_v32 = vld [vmem:[%s3402_s4 + $0xf0] sm:$0xff]  ;;  %v596_v33 = vld [vmem:[%s3402_s4 + $0xf8] sm:$0xff] }
  0x71   : > { %555 = vst [vmem:[#allocation4 + $0x50] sm:$0xff] %v554_v12 }
  0x72   : > { %557 = vst [vmem:[#allocation4 + $0x58] sm:$0xff] %v556_v13 }
  0x73   : > { %559 = vst [vmem:[#allocation4 + $0x60] sm:$0xff] %v558_v14 }
  0x74   : > { %561 = vst [vmem:[#allocation4 + $0x68] sm:$0xff] %v560_v15 }
  0x75   : > { %563 = vst [vmem:[#allocation4 + $0x70] sm:$0xff] %v562_v16 }
  0x76   : > { %565 = vst [vmem:[#allocation4 + $0x78] sm:$0xff] %v564_v17 }
  0x77   : > { %567 = vst [vmem:[#allocation4 + $0x80] sm:$0xff] %v566_v18 }
  0x78   : > { %569 = vst [vmem:[#allocation4 + $0x88] sm:$0xff] %v568_v19 }
  0x79   : > { %571 = vst [vmem:[#allocation4 + $0x90] sm:$0xff] %v570_v20 }
  0x7a   : > { %573 = vst [vmem:[#allocation4 + $0x98] sm:$0xff] %v572_v21 }
  0x7b   : > { %575 = vst [vmem:[#allocation4 + $0xa0] sm:$0xff] %v574_v22 }
  0x7c   : > { %577 = vst [vmem:[#allocation4 + $0xa8] sm:$0xff] %v576_v23 }
  0x7d   : > { %579 = vst [vmem:[#allocation4 + $0xb0] sm:$0xff] %v578_v24 }
  0x7e   : > { %581 = vst [vmem:[#allocation4 + $0xb8] sm:$0xff] %v580_v25 }
  0x7f   : > { %583 = vst [vmem:[#allocation4 + $0xc0] sm:$0xff] %v582_v26 }
  0x80   : > { %585 = vst [vmem:[#allocation4 + $0xc8] sm:$0xff] %v584_v27 }
  0x81   : > { %587 = vst [vmem:[#allocation4 + $0xd0] sm:$0xff] %v586_v28 }
  0x82   : > { %589 = vst [vmem:[#allocation4 + $0xd8] sm:$0xff] %v588_v29 }
  0x83   : > { %591 = vst [vmem:[#allocation4 + $0xe0] sm:$0xff] %v590_v30 }
  0x84   : > { %593 = vst [vmem:[#allocation4 + $0xe8] sm:$0xff] %v592_v31 }
  0x85   : > { %595 = vst [vmem:[#allocation4 + $0xf0] sm:$0xff] %v594_v32 }
  0x86   : > { %597 = vst [vmem:[#allocation4 + $0xf8] sm:$0xff] %v596_v33 }
  0x87   : > { %603 = vsyncadd [#allocation14], 4096 }
  0x88   : > { %2758 = dma.done.wait [#allocation14], 4096 }
  0x89   : > { %2759 = vsyncadd [#allocation14], 4294963200  ;;  %v2046_v34 = vld [vmem:[#allocation4 + $0x70] sm:$0xf]  ;;  %v2525_v35 = vld [vmem:[#allocation4 + $0x74] sm:$0xf0] }
  0x8a   : > { %v2047_v37 = vor.u32 %v2525_v35, %v2046_v34  ;;  %v2524_v39 = vld [vmem:[#allocation4 + $0x74] sm:$0xf]  ;;  %v2048_v40 = vld [vmem:[#allocation4 + $0x78] sm:$0xf0]  ;;  %v2038_v45 = vld [vmem:[#allocation4 + $0x60] sm:$0xf] }
  0x8b   : > { %v2051_v42 = vor.u32 %v2524_v39, %v2048_v40  ;;  %v2523_v47 = vld [vmem:[#allocation4 + $0x64] sm:$0xf0]  ;;  %v2102_v48 = vld [vmem:[#allocation4 + $0xe0] sm:$0xf]  ;;  %v2522_v52 = vld [vmem:[#allocation4 + $0x64] sm:$0xf] }
  0x8c   : > { %v2110_v36 = vld [vmem:[#allocation4 + $0xf0] sm:$0xf]  ;;  %v2540_v43 = vld [vmem:[#allocation4 + $0xf4] sm:$0xf]  ;;  %813 = vmatpush.bf16.msra.mxu0 %v2047_v37  ;;  %v2539_v49 = vld [vmem:[#allocation4 + $0xe4] sm:$0xf0]  ;;  %v2039_v50 = vor.u32 %v2523_v47, %v2038_v45 }
  0x8d   : > { %v2541_v38 = vld [vmem:[#allocation4 + $0xf4] sm:$0xf0]  ;;  %v2112_v44 = vld [vmem:[#allocation4 + $0xf8] sm:$0xf0]  ;;  %839 = vmatpush.bf16.msra.mxu2 %v2051_v42  ;;  %v2103_v51 = vor.u32 %v2539_v49, %v2102_v48  ;;  %v2040_v53 = vld [vmem:[#allocation4 + $0x68] sm:$0xf0] }
  0x8e   : > { %v2111_v41 = vor.u32 %v2541_v38, %v2110_v36  ;;  %v2115_v46 = vor.u32 %v2540_v43, %v2112_v44  ;;  %v2538_v54 = vld [vmem:[#allocation4 + $0xe4] sm:$0xf]  ;;  %v2043_v55 = vor.u32 %v2522_v52, %v2040_v53  ;;  %v2104_v56 = vld [vmem:[#allocation4 + $0xe8] sm:$0xf0]  ;;  %v2030_v57 = vld [vmem:[#allocation4 + $0x50] sm:$0xf] }
  0x8f   : > { %v2521_v58 = vld [vmem:[#allocation4 + $0x54] sm:$0xf0]  ;;  %v2107_v59 = vor.u32 %v2538_v54, %v2104_v56  ;;  %v2094_v60 = vld [vmem:[#allocation4 + $0xd0] sm:$0xf]  ;;  %v2520_v62 = vld [vmem:[#allocation4 + $0x54] sm:$0xf] }
  0x90   : > { %826 = vmatpush.bf16.msra.mxu1 %v2111_v41  ;;  %852 = vmatpush.bf16.msra.mxu3 %v2115_v46  ;;  %v2537_v61 = vld [vmem:[#allocation4 + $0xd4] sm:$0xf0]  ;;  %v2031_v63 = vor.u32 %v2521_v58, %v2030_v57  ;;  %v2032_v2 = vld [vmem:[#allocation4 + $0x58] sm:$0xf0]  ;;  %v2536_v3 = vld [vmem:[#allocation4 + $0xd4] sm:$0xf] }
  0x91   : > { %814 = vmatpush.bf16.msra.mxu0 %v2039_v50  ;;  %v2096_v4 = vld [vmem:[#allocation4 + $0xd8] sm:$0xf0]  ;;  %840 = vmatpush.bf16.msra.mxu2 %v2043_v55  ;;  %v2095_v5 = vor.u32 %v2537_v61, %v2094_v60  ;;  %v2035_v6 = vor.u32 %v2520_v62, %v2032_v2  ;;  %v2022_v7 = vld [vmem:[#allocation4 + $0x40] sm:$0xf]  ;;  %v2519_v8 = vld [vmem:[#allocation4 + $0x44] sm:$0xf0]  ;;  %v647_v2 = vunpack.c.l.b16 %v3124_v0 }
  0x92   : > { %v2086_v9 = vld [vmem:[#allocation4 + $0xc0] sm:$0xf]  ;;  %v2099_v10 = vor.u32 %v2536_v3, %v2096_v4  ;;  %v2535_v11 = vld [vmem:[#allocation4 + $0xc4] sm:$0xf0]  ;;  %v2518_v12 = vld [vmem:[#allocation4 + $0x44] sm:$0xf]  ;;  %v2023_v16 = vor.u32 %v2519_v8, %v2022_v7  ;;  %v648_v4 = vunpack.c.h.b16 %v3124_v0 }
  0x93   : > { %v2024_v13 = vld [vmem:[#allocation4 + $0x48] sm:$0xf0]  ;;  %v2534_v14 = vld [vmem:[#allocation4 + $0xc4] sm:$0xf]  ;;  %v2087_v17 = vor.u32 %v2535_v11, %v2086_v9  ;;  %v2014_v19 = vld [vmem:[#allocation4 + $0x30] sm:$0xf]  ;;  %v649_v8 = vpack.c.b16 %v647_v2, %v647_v2 }
  0x94   : > { %827 = vmatpush.bf16.msra.mxu1 %v2103_v51  ;;  %853 = vmatpush.bf16.msra.mxu3 %v2107_v59  ;;  %v2088_v15 = vld [vmem:[#allocation4 + $0xc8] sm:$0xf0]  ;;  %v2027_v18 = vor.u32 %v2518_v12, %v2024_v13  ;;  %v2517_v20 = vld [vmem:[#allocation4 + $0x34] sm:$0xf0]  ;;  %v2078_v21 = vld [vmem:[#allocation4 + $0xb0] sm:$0xf]  ;;  %v650_v9 = vpack.c.b16 %v648_v4, %v648_v4 }
  0x95   : > { %815 = vmatpush.bf16.msra.mxu0 %v2031_v63  ;;  %841 = vmatpush.bf16.msra.mxu2 %v2035_v6  ;;  %v2091_v22 = vor.u32 %v2534_v14, %v2088_v15  ;;  %v2533_v23 = vld [vmem:[#allocation4 + $0xb4] sm:$0xf0]  ;;  %v2516_v24 = vld [vmem:[#allocation4 + $0x34] sm:$0xf]  ;;  %v2016_v25 = vld [vmem:[#allocation4 + $0x38] sm:$0xf0]  ;;  %v2015_v28 = vor.u32 %v2517_v20, %v2014_v19 }
  0x96   : > { %v2532_v26 = vld [vmem:[#allocation4 + $0xb4] sm:$0xf]  ;;  %v2080_v27 = vld [vmem:[#allocation4 + $0xb8] sm:$0xf0]  ;;  %v2079_v29 = vor.u32 %v2533_v23, %v2078_v21  ;;  %v2019_v30 = vor.u32 %v2516_v24, %v2016_v25  ;;  %v2006_v31 = vld [vmem:[#allocation4 + $0x20] sm:$0xf] }
  0x97   : > { %v2515_v32 = vld [vmem:[#allocation4 + $0x24] sm:$0xf0]  ;;  %v2070_v33 = vld [vmem:[#allocation4 + $0xa0] sm:$0xf]  ;;  %v2083_v34 = vor.u32 %v2532_v26, %v2080_v27  ;;  %v2514_v36 = vld [vmem:[#allocation4 + $0x24] sm:$0xf] }
  0x98   : > { %828 = vmatpush.bf16.msra.mxu1 %v2095_v5  ;;  %854 = vmatpush.bf16.msra.mxu3 %v2099_v10  ;;  %v2531_v35 = vld [vmem:[#allocation4 + $0xa4] sm:$0xf0]  ;;  %v2008_v37 = vld [vmem:[#allocation4 + $0x28] sm:$0xf0]  ;;  %v2530_v38 = vld [vmem:[#allocation4 + $0xa4] sm:$0xf]  ;;  %v2007_v40 = vor.u32 %v2515_v32, %v2006_v31 }
  0x99   : > { %816 = vmatpush.bf16.msra.mxu0 %v2023_v16  ;;  %842 = vmatpush.bf16.msra.mxu2 %v2027_v18  ;;  %v2072_v39 = vld [vmem:[#allocation4 + $0xa8] sm:$0xf0]  ;;  %v2071_v41 = vor.u32 %v2531_v35, %v2070_v33  ;;  %v2011_v42 = vor.u32 %v2514_v36, %v2008_v37  ;;  %v1998_v43 = vld [vmem:[#allocation4 + $0x10] sm:$0xf]  ;;  %v2513_v44 = vld [vmem:[#allocation4 + $0x14] sm:$0xf0] }
  0x9a   : > { %v2062_v45 = vld [vmem:[#allocation4 + $0x90] sm:$0xf]  ;;  %v2075_v46 = vor.u32 %v2530_v38, %v2072_v39  ;;  %v2529_v47 = vld [vmem:[#allocation4 + $0x94] sm:$0xf0]  ;;  %v2512_v48 = vld [vmem:[#allocation4 + $0x14] sm:$0xf]  ;;  %v1999_v52 = vor.u32 %v2513_v44, %v1998_v43 }
  0x9b   : > { %v2000_v49 = vld [vmem:[#allocation4 + $0x18] sm:$0xf0]  ;;  %v2528_v50 = vld [vmem:[#allocation4 + $0x94] sm:$0xf]  ;;  %v2063_v53 = vor.u32 %v2529_v47, %v2062_v45  ;;  %v1990_v55 = vld [vmem:[#allocation4] sm:$0xf] }
  0x9c   : > { %829 = vmatpush.bf16.msra.mxu1 %v2087_v17  ;;  %855 = vmatpush.bf16.msra.mxu3 %v2091_v22  ;;  %v2064_v51 = vld [vmem:[#allocation4 + $0x98] sm:$0xf0]  ;;  %v2003_v54 = vor.u32 %v2512_v48, %v2000_v49  ;;  %v2511_v56 = vld [vmem:[#allocation4 + $0x4] sm:$0xf0]  ;;  %v2054_v57 = vld [vmem:[#allocation4 + $0x80] sm:$0xf] }
  0x9d   : > { %817 = vmatpush.bf16.msra.mxu0 %v2015_v28  ;;  %843 = vmatpush.bf16.msra.mxu2 %v2019_v30  ;;  %v2067_v58 = vor.u32 %v2528_v50, %v2064_v51  ;;  %v2527_v59 = vld [vmem:[#allocation4 + $0x84] sm:$0xf0]  ;;  %v2510_v60 = vld [vmem:[#allocation4 + $0x4] sm:$0xf]  ;;  %v1992_v61 = vld [vmem:[#allocation4 + $0x8] sm:$0xf0]  ;;  %v1991_v3 = vor.u32 %v2511_v56, %v1990_v55 }
  0x9e   : > { %v2526_v62 = vld [vmem:[#allocation4 + $0x84] sm:$0xf]  ;;  %v2056_v63 = vld [vmem:[#allocation4 + $0x88] sm:$0xf0]  ;;  %v2055_v5 = vor.u32 %v2527_v59, %v2054_v57  ;;  %v1995_v6 = vor.u32 %v2510_v60, %v1992_v61  ;;  %v640_v0 = vld [vmem:[%s3406_s8] sm:$0x3] }
  0x9f   : > { %v2059_v7 = vor.u32 %v2526_v62, %v2056_v63  ;;  %v642_v12 = vperm.slane %v640_v0, 0  ;;  %v643_v13 = vperm.slane %v640_v0, 1 }
  0xa0   : > { %830 = vmatpush.bf16.msra.mxu1 %v2079_v29  ;;  %856 = vmatpush.bf16.msra.mxu3 %v2083_v34 }
  0xa1   : > { %818 = vmatpush.bf16.msra.mxu0 %v2007_v40  ;;  %844 = vmatpush.bf16.msra.mxu2 %v2011_v42 }
  0xa4   : > { %831 = vmatpush.bf16.msra.mxu1 %v2071_v41  ;;  %857 = vmatpush.bf16.msra.mxu3 %v2075_v46 }
  0xa5   : > { %819 = vmatpush.bf16.msra.mxu0 %v1999_v52  ;;  %845 = vmatpush.bf16.msra.mxu2 %v2003_v54 }
  0xa8   : > { %832 = vmatpush.bf16.msra.mxu1 %v2063_v53  ;;  %858 = vmatpush.bf16.msra.mxu3 %v2067_v58 }
  0xa9   : > { %820 = vmatpush.bf16.msra.mxu0 %v1991_v3  ;;  %846 = vmatpush.bf16.msra.mxu2 %v1995_v6 }
  0xac   : > { %833 = vmatpush.bf16.msra.mxu1 %v2055_v5  ;;  %859 = vmatpush.bf16.msra.mxu3 %v2059_v7 }
  0xad   : > { %821 = vmatmul.bf16.vlgmr.msra.gmra.mxu0 %v649_v8  ;;  %847 = vmatmul.bf16.vlgmr.msra.gmra.mxu2 %v649_v8 }
  0xaf   : > { %834 = vmatmul.bf16.vlgmr.msra.gmra.mxu1 %v650_v9  ;;  %860 = vmatmul.bf16.vlgmr.msra.gmra.mxu3 %v650_v9 }
 0x12a   : > { %v822_v10 = vpop.f32.mrf.mxu0 }
 0x12b   : > { %v823_v14 = vadd.f32 %v822_v10, %v642_v12 }
 0x12c   : > { %v835_v11 = vpop.f32.mrf.mxu1 }
 0x12d   : > { %v836_v20 = vadd.f32 %v835_v11, %v823_v14 }
 0x130   : > { %v848_v15 = vpop.f32.mrf.mxu2 }
 0x131   : > { %v849_v16 = vadd.f32 %v848_v15, %v643_v13 }
 0x132   : > { %v861_v17 = vpop.f32.mrf.mxu3  ;;  %v824_v18 = vpop.f32.mrf.mxu0 }
 0x133   : > { %v862_v21 = vadd.f32 %v861_v17, %v849_v16 }
 0x134   : > { %v837_v19 = vpop.f32.mrf.mxu1 }
 0x135   : > { %v3234_v22 = vpack.c.bf16 %v862_v21, %v836_v20 }
 0x138   : > { %v850_v23 = vpop.f32.mrf.mxu2 }
 0x13a   : > { %v863_v24 = vpop.f32.mrf.mxu3 }
 0x13b   : > { %v877_v25 = vld [vmem:[%s3403_s5] sm:$0xff]  ;;  %v879_v26 = vld [vmem:[%s3403_s5 + $0x8] sm:$0xff]  ;;  %v881_v27 = vld [vmem:[%s3403_s5 + $0x10] sm:$0xff] }
 0x13c   : > { %878 = vst [vmem:[#allocation4] sm:$0xff] %v877_v25  ;;  %v883_v28 = vld [vmem:[%s3403_s5 + $0x18] sm:$0xff]  ;;  %v885_v29 = vld [vmem:[%s3403_s5 + $0x20] sm:$0xff]  ;;  %v887_v30 = vld [vmem:[%s3403_s5 + $0x28] sm:$0xff] }
 0x13d   : > { %880 = vst [vmem:[#allocation4 + $0x8] sm:$0xff] %v879_v26  ;;  %v889_v31 = vld [vmem:[%s3403_s5 + $0x30] sm:$0xff]  ;;  %v891_v32 = vld [vmem:[%s3403_s5 + $0x38] sm:$0xff]  ;;  %v893_v33 = vld [vmem:[%s3403_s5 + $0x40] sm:$0xff] }
 0x13e   : > { %882 = vst [vmem:[#allocation4 + $0x10] sm:$0xff] %v881_v27  ;;  %v895_v34 = vld [vmem:[%s3403_s5 + $0x48] sm:$0xff]  ;;  %v897_v35 = vld [vmem:[%s3403_s5 + $0x50] sm:$0xff]  ;;  %v899_v36 = vld [vmem:[%s3403_s5 + $0x58] sm:$0xff] }
 0x13f   : > { %884 = vst [vmem:[#allocation4 + $0x18] sm:$0xff] %v883_v28  ;;  %v901_v37 = vld [vmem:[%s3403_s5 + $0x60] sm:$0xff]  ;;  %v903_v38 = vld [vmem:[%s3403_s5 + $0x68] sm:$0xff]  ;;  %v905_v39 = vld [vmem:[%s3403_s5 + $0x70] sm:$0xff] }
 0x140   : > { %886 = vst [vmem:[#allocation4 + $0x20] sm:$0xff] %v885_v29  ;;  %v907_v40 = vld [vmem:[%s3403_s5 + $0x78] sm:$0xff]  ;;  %v909_v41 = vld [vmem:[%s3403_s5 + $0x80] sm:$0xff]  ;;  %v911_v42 = vld [vmem:[%s3403_s5 + $0x88] sm:$0xff] }
 0x141   : > { %888 = vst [vmem:[#allocation4 + $0x28] sm:$0xff] %v887_v30  ;;  %v913_v43 = vld [vmem:[%s3403_s5 + $0x90] sm:$0xff]  ;;  %v915_v44 = vld [vmem:[%s3403_s5 + $0x98] sm:$0xff]  ;;  %v917_v45 = vld [vmem:[%s3403_s5 + $0xa0] sm:$0xff] }
 0x142   : > { %890 = vst [vmem:[#allocation4 + $0x30] sm:$0xff] %v889_v31  ;;  %v919_v46 = vld [vmem:[%s3403_s5 + $0xa8] sm:$0xff]  ;;  %v921_v47 = vld [vmem:[%s3403_s5 + $0xb0] sm:$0xff]  ;;  %v923_v48 = vld [vmem:[%s3403_s5 + $0xb8] sm:$0xff] }
 0x143   : > { %892 = vst [vmem:[#allocation4 + $0x38] sm:$0xff] %v891_v32  ;;  %v925_v49 = vld [vmem:[%s3403_s5 + $0xc0] sm:$0xff]  ;;  %v927_v50 = vld [vmem:[%s3403_s5 + $0xc8] sm:$0xff]  ;;  %v929_v51 = vld [vmem:[%s3403_s5 + $0xd0] sm:$0xff] }
 0x144   : > { %894 = vst [vmem:[#allocation4 + $0x40] sm:$0xff] %v893_v33  ;;  %v931_v52 = vld [vmem:[%s3403_s5 + $0xd8] sm:$0xff]  ;;  %v933_v53 = vld [vmem:[%s3403_s5 + $0xe0] sm:$0xff]  ;;  %v935_v54 = vld [vmem:[%s3403_s5 + $0xe8] sm:$0xff] }
 0x145   : > { %896 = vst [vmem:[#allocation4 + $0x48] sm:$0xff] %v895_v34  ;;  %v937_v55 = vld [vmem:[%s3403_s5 + $0xf0] sm:$0xff]  ;;  %v939_v56 = vld [vmem:[%s3403_s5 + $0xf8] sm:$0xff] }
 0x146   : > { %898 = vst [vmem:[#allocation4 + $0x50] sm:$0xff] %v897_v35 }
 0x147   : > { %900 = vst [vmem:[#allocation4 + $0x58] sm:$0xff] %v899_v36 }
 0x148   : > { %902 = vst [vmem:[#allocation4 + $0x60] sm:$0xff] %v901_v37 }
 0x149   : > { %904 = vst [vmem:[#allocation4 + $0x68] sm:$0xff] %v903_v38 }
 0x14a   : > { %906 = vst [vmem:[#allocation4 + $0x70] sm:$0xff] %v905_v39 }
 0x14b   : > { %908 = vst [vmem:[#allocation4 + $0x78] sm:$0xff] %v907_v40 }
 0x14c   : > { %910 = vst [vmem:[#allocation4 + $0x80] sm:$0xff] %v909_v41 }
 0x14d   : > { %912 = vst [vmem:[#allocation4 + $0x88] sm:$0xff] %v911_v42 }
 0x14e   : > { %914 = vst [vmem:[#allocation4 + $0x90] sm:$0xff] %v913_v43 }
 0x14f   : > { %916 = vst [vmem:[#allocation4 + $0x98] sm:$0xff] %v915_v44 }
 0x150   : > { %918 = vst [vmem:[#allocation4 + $0xa0] sm:$0xff] %v917_v45 }
 0x151   : > { %920 = vst [vmem:[#allocation4 + $0xa8] sm:$0xff] %v919_v46 }
 0x152   : > { %922 = vst [vmem:[#allocation4 + $0xb0] sm:$0xff] %v921_v47 }
 0x153   : > { %924 = vst [vmem:[#allocation4 + $0xb8] sm:$0xff] %v923_v48 }
 0x154   : > { %926 = vst [vmem:[#allocation4 + $0xc0] sm:$0xff] %v925_v49 }
 0x155   : > { %928 = vst [vmem:[#allocation4 + $0xc8] sm:$0xff] %v927_v50 }
 0x156   : > { %930 = vst [vmem:[#allocation4 + $0xd0] sm:$0xff] %v929_v51 }
 0x157   : > { %932 = vst [vmem:[#allocation4 + $0xd8] sm:$0xff] %v931_v52 }
 0x158   : > { %934 = vst [vmem:[#allocation4 + $0xe0] sm:$0xff] %v933_v53 }
 0x159   : > { %936 = vst [vmem:[#allocation4 + $0xe8] sm:$0xff] %v935_v54 }
 0x15a   : > { %938 = vst [vmem:[#allocation4 + $0xf0] sm:$0xff] %v937_v55 }
 0x15b   : > { %940 = vst [vmem:[#allocation4 + $0xf8] sm:$0xff] %v939_v56 }
 0x15c   : > { %946 = vsyncadd [#allocation16], 4096 }
 0x15d   : > { %2760 = dma.done.wait [#allocation16], 4096 }
 0x15e   : > { %2761 = vsyncadd [#allocation16], 4294963200  ;;  %v2174_v57 = vld [vmem:[#allocation4 + $0x70] sm:$0xf]  ;;  %v2557_v58 = vld [vmem:[#allocation4 + $0x74] sm:$0xf0] }
 0x15f   : > { %v2175_v60 = vor.u32 %v2557_v58, %v2174_v57  ;;  %v2556_v62 = vld [vmem:[#allocation4 + $0x74] sm:$0xf]  ;;  %v2176_v63 = vld [vmem:[#allocation4 + $0x78] sm:$0xf0]  ;;  %v2166_v6 = vld [vmem:[#allocation4 + $0x60] sm:$0xf] }
 0x160   : > { %v2179_v3 = vor.u32 %v2556_v62, %v2176_v63  ;;  %v2555_v8 = vld [vmem:[#allocation4 + $0x64] sm:$0xf0]  ;;  %v2230_v9 = vld [vmem:[#allocation4 + $0xe0] sm:$0xf]  ;;  %v2554_v12 = vld [vmem:[#allocation4 + $0x64] sm:$0xf] }
 0x161   : > { %v2238_v59 = vld [vmem:[#allocation4 + $0xf0] sm:$0xf]  ;;  %v2572_v4 = vld [vmem:[#allocation4 + $0xf4] sm:$0xf]  ;;  %1156 = vmatpush.bf16.msrb.mxu0 %v2175_v60  ;;  %v2571_v0 = vld [vmem:[#allocation4 + $0xe4] sm:$0xf0]  ;;  %v2167_v10 = vor.u32 %v2555_v8, %v2166_v6 }
 0x162   : > { %v2573_v61 = vld [vmem:[#allocation4 + $0xf4] sm:$0xf0]  ;;  %v2240_v5 = vld [vmem:[#allocation4 + $0xf8] sm:$0xf0]  ;;  %1182 = vmatpush.bf16.msrb.mxu2 %v2179_v3  ;;  %v2231_v11 = vor.u32 %v2571_v0, %v2230_v9  ;;  %v2168_v13 = vld [vmem:[#allocation4 + $0x68] sm:$0xf0] }
 0x163   : > { %v2239_v2 = vor.u32 %v2573_v61, %v2238_v59  ;;  %v2243_v7 = vor.u32 %v2572_v4, %v2240_v5  ;;  %v2570_v14 = vld [vmem:[#allocation4 + $0xe4] sm:$0xf]  ;;  %v2171_v15 = vor.u32 %v2554_v12, %v2168_v13  ;;  %v2232_v16 = vld [vmem:[#allocation4 + $0xe8] sm:$0xf0]  ;;  %v2158_v17 = vld [vmem:[#allocation4 + $0x50] sm:$0xf] }
 0x164   : > { %v2553_v18 = vld [vmem:[#allocation4 + $0x54] sm:$0xf0]  ;;  %v2235_v19 = vor.u32 %v2570_v14, %v2232_v16  ;;  %v2222_v20 = vld [vmem:[#allocation4 + $0xd0] sm:$0xf]  ;;  %v2552_v23 = vld [vmem:[#allocation4 + $0x54] sm:$0xf] }
 0x165   : > { %1169 = vmatpush.bf16.msrb.mxu1 %v2239_v2  ;;  %1195 = vmatpush.bf16.msrb.mxu3 %v2243_v7  ;;  %v2569_v21 = vld [vmem:[#allocation4 + $0xd4] sm:$0xf0]  ;;  %v2159_v24 = vor.u32 %v2553_v18, %v2158_v17  ;;  %v2160_v25 = vld [vmem:[#allocation4 + $0x58] sm:$0xf0]  ;;  %v2568_v26 = vld [vmem:[#allocation4 + $0xd4] sm:$0xf] }
 0x166   : > { %1157 = vmatpush.bf16.msrb.mxu0 %v2167_v10  ;;  %v2224_v27 = vld [vmem:[#allocation4 + $0xd8] sm:$0xf0]  ;;  %1183 = vmatpush.bf16.msrb.mxu2 %v2171_v15  ;;  %v2223_v28 = vor.u32 %v2569_v21, %v2222_v20  ;;  %v2163_v29 = vor.u32 %v2552_v23, %v2160_v25  ;;  %v2150_v30 = vld [vmem:[#allocation4 + $0x40] sm:$0xf]  ;;  %v2551_v31 = vld [vmem:[#allocation4 + $0x44] sm:$0xf0] }
 0x167   : > { %v2214_v32 = vld [vmem:[#allocation4 + $0xc0] sm:$0xf]  ;;  %v2227_v33 = vor.u32 %v2568_v26, %v2224_v27  ;;  %v2567_v34 = vld [vmem:[#allocation4 + $0xc4] sm:$0xf0]  ;;  %v2550_v35 = vld [vmem:[#allocation4 + $0x44] sm:$0xf]  ;;  %v2151_v39 = vor.u32 %v2551_v31, %v2150_v30 }
 0x168   : > { %v2152_v36 = vld [vmem:[#allocation4 + $0x48] sm:$0xf0]  ;;  %v2566_v37 = vld [vmem:[#allocation4 + $0xc4] sm:$0xf]  ;;  %v2215_v40 = vor.u32 %v2567_v34, %v2214_v32  ;;  %v2142_v42 = vld [vmem:[#allocation4 + $0x30] sm:$0xf]  ;;  %v990_v32 = vunpack.c.l.b16 %v3131_v1 }
 0x169   : > { %1170 = vmatpush.bf16.msrb.mxu1 %v2231_v11  ;;  %1196 = vmatpush.bf16.msrb.mxu3 %v2235_v19  ;;  %v2216_v38 = vld [vmem:[#allocation4 + $0xc8] sm:$0xf0]  ;;  %v2155_v41 = vor.u32 %v2550_v35, %v2152_v36  ;;  %v2549_v43 = vld [vmem:[#allocation4 + $0x34] sm:$0xf0]  ;;  %v2206_v44 = vld [vmem:[#allocation4 + $0xb0] sm:$0xf] }
 0x16a   : > { %1158 = vmatpush.bf16.msrb.mxu0 %v2159_v24  ;;  %1184 = vmatpush.bf16.msrb.mxu2 %v2163_v29  ;;  %v2219_v45 = vor.u32 %v2566_v37, %v2216_v38  ;;  %v2565_v46 = vld [vmem:[#allocation4 + $0xb4] sm:$0xf0]  ;;  %v2548_v47 = vld [vmem:[#allocation4 + $0x34] sm:$0xf]  ;;  %v2144_v48 = vld [vmem:[#allocation4 + $0x38] sm:$0xf0]  ;;  %v2143_v51 = vor.u32 %v2549_v43, %v2142_v42  ;;  %v991_v37 = vunpack.c.h.b16 %v3131_v1 }
 0x16b   : > { %v2564_v49 = vld [vmem:[#allocation4 + $0xb4] sm:$0xf]  ;;  %v2208_v50 = vld [vmem:[#allocation4 + $0xb8] sm:$0xf0]  ;;  %v2207_v52 = vor.u32 %v2565_v46, %v2206_v44  ;;  %v2147_v53 = vor.u32 %v2548_v47, %v2144_v48  ;;  %v2134_v54 = vld [vmem:[#allocation4 + $0x20] sm:$0xf] }
 0x16c   : > { %v2547_v55 = vld [vmem:[#allocation4 + $0x24] sm:$0xf0]  ;;  %v2198_v56 = vld [vmem:[#allocation4 + $0xa0] sm:$0xf]  ;;  %v2211_v57 = vor.u32 %v2564_v49, %v2208_v50  ;;  %v2546_v59 = vld [vmem:[#allocation4 + $0x24] sm:$0xf]  ;;  %v992_v49 = vpack.c.b16 %v990_v32, %v990_v32 }
 0x16d   : > { %1171 = vmatpush.bf16.msrb.mxu1 %v2223_v28  ;;  %1197 = vmatpush.bf16.msrb.mxu3 %v2227_v33  ;;  %v2563_v58 = vld [vmem:[#allocation4 + $0xa4] sm:$0xf0]  ;;  %v2136_v60 = vld [vmem:[#allocation4 + $0x28] sm:$0xf0]  ;;  %v2562_v61 = vld [vmem:[#allocation4 + $0xa4] sm:$0xf]  ;;  %v2135_v63 = vor.u32 %v2547_v55, %v2134_v54 }
 0x16e   : > { %1159 = vmatpush.bf16.msrb.mxu0 %v2151_v39  ;;  %1185 = vmatpush.bf16.msrb.mxu2 %v2155_v41  ;;  %v2200_v62 = vld [vmem:[#allocation4 + $0xa8] sm:$0xf0]  ;;  %v2199_v2 = vor.u32 %v2563_v58, %v2198_v56  ;;  %v2139_v3 = vor.u32 %v2546_v59, %v2136_v60  ;;  %v2126_v4 = vld [vmem:[#allocation4 + $0x10] sm:$0xf]  ;;  %v2545_v5 = vld [vmem:[#allocation4 + $0x14] sm:$0xf0] }
 0x16f   : > { %v2190_v6 = vld [vmem:[#allocation4 + $0x90] sm:$0xf]  ;;  %v2203_v7 = vor.u32 %v2562_v61, %v2200_v62  ;;  %v2561_v8 = vld [vmem:[#allocation4 + $0x94] sm:$0xf0]  ;;  %v2544_v9 = vld [vmem:[#allocation4 + $0x14] sm:$0xf]  ;;  %v2127_v12 = vor.u32 %v2545_v5, %v2126_v4 }
 0x170   : > { %v2128_v0 = vld [vmem:[#allocation4 + $0x18] sm:$0xf0]  ;;  %v2560_v10 = vld [vmem:[#allocation4 + $0x94] sm:$0xf]  ;;  %v2118_v13 = vld [vmem:[#allocation4] sm:$0xf]  ;;  %v2191_v15 = vor.u32 %v2561_v8, %v2190_v6 }
 0x171   : > { %1172 = vmatpush.bf16.msrb.mxu1 %v2215_v40  ;;  %1198 = vmatpush.bf16.msrb.mxu3 %v2219_v45  ;;  %v2192_v11 = vld [vmem:[#allocation4 + $0x98] sm:$0xf0]  ;;  %v2543_v14 = vld [vmem:[#allocation4 + $0x4] sm:$0xf0]  ;;  %v2131_v16 = vor.u32 %v2544_v9, %v2128_v0  ;;  %v2182_v17 = vld [vmem:[#allocation4 + $0x80] sm:$0xf] }
 0x172   : > { %1160 = vmatpush.bf16.msrb.mxu0 %v2143_v51  ;;  %1186 = vmatpush.bf16.msrb.mxu2 %v2147_v53  ;;  %v2559_v18 = vld [vmem:[#allocation4 + $0x84] sm:$0xf0]  ;;  %v2542_v19 = vld [vmem:[#allocation4 + $0x4] sm:$0xf]  ;;  %v2195_v20 = vor.u32 %v2560_v10, %v2192_v11  ;;  %v2120_v21 = vld [vmem:[#allocation4 + $0x8] sm:$0xf0]  ;;  %v2119_v28 = vor.u32 %v2543_v14, %v2118_v13 }
 0x173   : > { %v2558_v23 = vld [vmem:[#allocation4 + $0x84] sm:$0xf]  ;;  %v2184_v24 = vld [vmem:[#allocation4 + $0x88] sm:$0xf0]  ;;  %v2302_v25 = vld [vmem:[#allocation2 + $0x70] sm:$0xf]  ;;  %v2183_v33 = vor.u32 %v2559_v18, %v2182_v17  ;;  %v2123_v34 = vor.u32 %v2542_v19, %v2120_v21 }
 0x174   : > { %v2589_v26 = vld [vmem:[#allocation2 + $0x74] sm:$0xf0]  ;;  %v2366_v27 = vld [vmem:[#allocation2 + $0xf0] sm:$0xf]  ;;  %v2588_v30 = vld [vmem:[#allocation2 + $0x74] sm:$0xf]  ;;  %v2187_v38 = vor.u32 %v2558_v23, %v2184_v24 }
 0x175   : > { %1173 = vmatpush.bf16.msrb.mxu1 %v2207_v52  ;;  %1199 = vmatpush.bf16.msrb.mxu3 %v2211_v57  ;;  %v2605_v29 = vld [vmem:[#allocation2 + $0xf4] sm:$0xf0]  ;;  %v2304_v31 = vld [vmem:[#allocation2 + $0x78] sm:$0xf0]  ;;  %v2604_v35 = vld [vmem:[#allocation2 + $0xf4] sm:$0xf]  ;;  %v2303_v39 = vor.u32 %v2589_v26, %v2302_v25  ;;  %v993_v52 = vpack.c.b16 %v991_v37, %v991_v37 }
 0x176   : > { %1161 = vmatpush.bf16.msrb.mxu0 %v2135_v63  ;;  %1187 = vmatpush.bf16.msrb.mxu2 %v2139_v3  ;;  %v2368_v36 = vld [vmem:[#allocation2 + $0xf8] sm:$0xf0]  ;;  %v2367_v40 = vor.u32 %v2605_v29, %v2366_v27  ;;  %v2307_v41 = vor.u32 %v2588_v30, %v2304_v31  ;;  %v2294_v42 = vld [vmem:[#allocation2 + $0x60] sm:$0xf]  ;;  %v2587_v43 = vld [vmem:[#allocation2 + $0x64] sm:$0xf0] }
 0x177   : > { %v2358_v44 = vld [vmem:[#allocation2 + $0xe0] sm:$0xf]  ;;  %v2371_v45 = vor.u32 %v2604_v35, %v2368_v36  ;;  %v2603_v46 = vld [vmem:[#allocation2 + $0xe4] sm:$0xf0]  ;;  %v2586_v47 = vld [vmem:[#allocation2 + $0x64] sm:$0xf]  ;;  %v2295_v1 = vor.u32 %v2587_v43, %v2294_v42 }
 0x178   : > { %v2296_v48 = vld [vmem:[#allocation2 + $0x68] sm:$0xf0]  ;;  %v2602_v50 = vld [vmem:[#allocation2 + $0xe4] sm:$0xf]  ;;  %v2359_v53 = vor.u32 %v2603_v46, %v2358_v44  ;;  %v2286_v55 = vld [vmem:[#allocation2 + $0x50] sm:$0xf] }
 0x179   : > { %1174 = vmatpush.bf16.msrb.mxu1 %v2199_v2  ;;  %1200 = vmatpush.bf16.msrb.mxu3 %v2203_v7  ;;  %v2360_v51 = vld [vmem:[#allocation2 + $0xe8] sm:$0xf0]  ;;  %v2299_v54 = vor.u32 %v2586_v47, %v2296_v48  ;;  %v2585_v56 = vld [vmem:[#allocation2 + $0x54] sm:$0xf0]  ;;  %v2350_v57 = vld [vmem:[#allocation2 + $0xd0] sm:$0xf] }
 0x17a   : > { %1162 = vmatpush.bf16.msrb.mxu0 %v2127_v12  ;;  %1188 = vmatpush.bf16.msrb.mxu2 %v2131_v16  ;;  %v2363_v58 = vor.u32 %v2602_v50, %v2360_v51  ;;  %v2601_v59 = vld [vmem:[#allocation2 + $0xd4] sm:$0xf0]  ;;  %v2584_v60 = vld [vmem:[#allocation2 + $0x54] sm:$0xf]  ;;  %v2288_v61 = vld [vmem:[#allocation2 + $0x58] sm:$0xf0]  ;;  %v2287_v2 = vor.u32 %v2585_v56, %v2286_v55 }
 0x17b   : > { %v2600_v62 = vld [vmem:[#allocation2 + $0xd4] sm:$0xf]  ;;  %v2352_v63 = vld [vmem:[#allocation2 + $0xd8] sm:$0xf0]  ;;  %v2351_v3 = vor.u32 %v2601_v59, %v2350_v57  ;;  %v2291_v4 = vor.u32 %v2584_v60, %v2288_v61  ;;  %v2278_v5 = vld [vmem:[#allocation2 + $0x40] sm:$0xf] }
 0x17c   : > { %v2583_v6 = vld [vmem:[#allocation2 + $0x44] sm:$0xf0]  ;;  %v2342_v7 = vld [vmem:[#allocation2 + $0xc0] sm:$0xf]  ;;  %v2355_v8 = vor.u32 %v2600_v62, %v2352_v63  ;;  %v2582_v0 = vld [vmem:[#allocation2 + $0x44] sm:$0xf] }
 0x17d   : > { %1175 = vmatpush.bf16.msrb.mxu1 %v2191_v15  ;;  %1201 = vmatpush.bf16.msrb.mxu3 %v2195_v20  ;;  %v2599_v9 = vld [vmem:[#allocation2 + $0xc4] sm:$0xf0]  ;;  %v2280_v10 = vld [vmem:[#allocation2 + $0x48] sm:$0xf0]  ;;  %v2598_v11 = vld [vmem:[#allocation2 + $0xc4] sm:$0xf]  ;;  %v2279_v13 = vor.u32 %v2583_v6, %v2278_v5 }
 0x17e   : > { %1163 = vmatpush.bf16.msrb.mxu0 %v2119_v28  ;;  %1189 = vmatpush.bf16.msrb.mxu2 %v2123_v34  ;;  %v2344_v12 = vld [vmem:[#allocation2 + $0xc8] sm:$0xf0]  ;;  %v2343_v14 = vor.u32 %v2599_v9, %v2342_v7  ;;  %v2283_v15 = vor.u32 %v2582_v0, %v2280_v10  ;;  %v2270_v16 = vld [vmem:[#allocation2 + $0x30] sm:$0xf]  ;;  %v2581_v17 = vld [vmem:[#allocation2 + $0x34] sm:$0xf0] }
 0x17f   : > { %v2334_v18 = vld [vmem:[#allocation2 + $0xb0] sm:$0xf]  ;;  %v2347_v19 = vor.u32 %v2598_v11, %v2344_v12  ;;  %v2597_v20 = vld [vmem:[#allocation2 + $0xb4] sm:$0xf0]  ;;  %v2580_v21 = vld [vmem:[#allocation2 + $0x34] sm:$0xf]  ;;  %v2271_v26 = vor.u32 %v2581_v17, %v2270_v16  ;;  %v1526_v11 = vunpack.c.h.b16 %v3234_v22 }
 0x180   : > { %v2272_v23 = vld [vmem:[#allocation2 + $0x38] sm:$0xf0]  ;;  %v2596_v24 = vld [vmem:[#allocation2 + $0xb4] sm:$0xf]  ;;  %v2335_v27 = vor.u32 %v2597_v20, %v2334_v18  ;;  %v2262_v29 = vld [vmem:[#allocation2 + $0x20] sm:$0xf] }
 0x181   : > { %1176 = vmatpush.bf16.msrb.mxu1 %v2183_v33  ;;  %1202 = vmatpush.bf16.msrb.mxu3 %v2187_v38  ;;  %v2336_v25 = vld [vmem:[#allocation2 + $0xb8] sm:$0xf0]  ;;  %v2275_v28 = vor.u32 %v2580_v21, %v2272_v23  ;;  %v2579_v30 = vld [vmem:[#allocation2 + $0x24] sm:$0xf0]  ;;  %v2326_v31 = vld [vmem:[#allocation2 + $0xa0] sm:$0xf] }
 0x182   : > { %1416 = vmatpush.bf16.msra.mxu0 %v2303_v39  ;;  %1442 = vmatpush.bf16.msra.mxu2 %v2307_v41  ;;  %v2339_v32 = vor.u32 %v2596_v24, %v2336_v25  ;;  %v2595_v33 = vld [vmem:[#allocation2 + $0xa4] sm:$0xf0]  ;;  %v2578_v34 = vld [vmem:[#allocation2 + $0x24] sm:$0xf]  ;;  %v2264_v35 = vld [vmem:[#allocation2 + $0x28] sm:$0xf0]  ;;  %v2263_v38 = vor.u32 %v2579_v30, %v2262_v29 }
 0x183   : > { %1190 = vmatmul.bf16.vlgmr.msrb.gmra.mxu2 %v992_v49  ;;  %1164 = vmatmul.bf16.vlgmr.msrb.gmra.mxu0 %v992_v49  ;;  %v2594_v36 = vld [vmem:[#allocation2 + $0xa4] sm:$0xf]  ;;  %v2328_v37 = vld [vmem:[#allocation2 + $0xa8] sm:$0xf0]  ;;  %v2327_v39 = vor.u32 %v2595_v33, %v2326_v31  ;;  %v2254_v41 = vld [vmem:[#allocation2 + $0x10] sm:$0xf] }
 0x184   : > { %1203 = vmatmul.bf16.vlgmr.msrb.gmra.mxu3 %v993_v52  ;;  %1177 = vmatmul.bf16.vlgmr.msrb.gmra.mxu1 %v993_v52  ;;  %v2577_v42 = vld [vmem:[#allocation2 + $0x14] sm:$0xf0]  ;;  %v2318_v43 = vld [vmem:[#allocation2 + $0x90] sm:$0xf]  ;;  %v2331_v44 = vor.u32 %v2594_v36, %v2328_v37  ;;  %v2576_v46 = vld [vmem:[#allocation2 + $0x14] sm:$0xf] }
 0x185   : > { %1429 = vmatpush.bf16.msra.mxu1 %v2367_v40  ;;  %1455 = vmatpush.bf16.msra.mxu3 %v2371_v45  ;;  %v2267_v40 = vor.u32 %v2578_v34, %v2264_v35  ;;  %v2593_v45 = vld [vmem:[#allocation2 + $0x94] sm:$0xf0]  ;;  %v2256_v47 = vld [vmem:[#allocation2 + $0x18] sm:$0xf0]  ;;  %v2592_v48 = vld [vmem:[#allocation2 + $0x94] sm:$0xf]  ;;  %v2255_v50 = vor.u32 %v2577_v42, %v2254_v41 }
 0x186   : > { %1417 = vmatpush.bf16.msra.mxu0 %v2295_v1  ;;  %1443 = vmatpush.bf16.msra.mxu2 %v2299_v54  ;;  %v2320_v49 = vld [vmem:[#allocation2 + $0x98] sm:$0xf0]  ;;  %v1210_v51 = vld [vmem:[%s338_s24] sm:$0xff]  ;;  %v2319_v52 = vor.u32 %v2593_v45, %v2318_v43  ;;  %v2259_v1 = vor.u32 %v2576_v46, %v2256_v47  ;;  %v2575_v54 = vld [vmem:[#allocation2 + $0x4] sm:$0xf0]  ;;  %vm1500_vm0 = vcmask 1043456  }
 0x187   : > { %v2310_v55 = vld [vmem:[#allocation2 + $0x80] sm:$0xf]  ;;  %v2323_v56 = vor.u32 %v2592_v48, %v2320_v49  ;;  %v2591_v57 = vld [vmem:[#allocation2 + $0x84] sm:$0xf0]  ;;  %v2248_v59 = vld [vmem:[#allocation2 + $0x8] sm:$0xf0]  ;;  %v1250_v62 = vunpack.c.l.b16 %v1210_v51 }
 0x188   : > { %v2590_v60 = vld [vmem:[#allocation2 + $0x84] sm:$0xf]  ;;  %v2312_v61 = vld [vmem:[#allocation2 + $0x88] sm:$0xf0]  ;;  %v1243_v29 = vld [vmem:[%s3405_s7] sm:$0x3] }
 0x189   : > { %1430 = vmatpush.bf16.msra.mxu1 %v2359_v53  ;;  %1456 = vmatpush.bf16.msra.mxu3 %v2363_v58  ;;  %v2246_v53 = vld [vmem:[#allocation2] sm:$0xf]  ;;  %v2574_v58 = vld [vmem:[#allocation2 + $0x4] sm:$0xf]  ;;  %v2315_v5 = vor.u32 %v2590_v60, %v2312_v61  ;;  %v1252_v6 = vpack.c.b16 %v1250_v62, %v1250_v62  ;;  %v1245_v30 = vperm.slane %v1243_v29, 0  ;;  %v1246_v34 = vperm.slane %v1243_v29, 1 }
 0x18a   : > { %1418 = vmatpush.bf16.msra.mxu0 %v2287_v2  ;;  %1444 = vmatpush.bf16.msra.mxu2 %v2291_v4  ;;  %v2247_v63 = vor.u32 %v2575_v54, %v2246_v53  ;;  %v1251_v2 = vunpack.c.h.b16 %v1210_v51  ;;  %v2251_v4 = vor.u32 %v2574_v58, %v2248_v59  ;;  %vm1486_vm1 = vcmask 64512   ;;  %v2480_v29 = vld [vmem:[#allocation3 + $0xd0] sm:$0xf]  ;;  %s2638_s26 = sshll.u32 %s2780_s20, 3  ;;  %s1854_s12 = sshll.u32 %s329_s19, 4  ;;  %s1855_s12 = int_to_ptr.vmem [resolvable:$true] %s1854_s12 }
 0x18b   : > { %s1852_s21 = scalar_lea.hbm %s3409_s11, %s2638_s26  ;;  %s3427_s20 = sand.u32 1, %s2772_s18  }
 0x18c   : > { %v1253_v7 = vpack.c.b16 %v1251_v2, %v1251_v2  ;;  %s1856_s30 = sshll.u32 %s1852_s21, 4  ;;  %s1839_s17 = scalar_lea.sflag [#allocation9], %s3427_s20  ;;  %s1857_s30 = int_to_ptr.hbm [resolvable:$true] %s1856_s30 }
 0x18d   : > { %1431 = vmatpush.bf16.msra.mxu1 %v2351_v3  ;;  %1457 = vmatpush.bf16.msra.mxu3 %v2355_v8  ;;  %v2311_v3 = vor.u32 %v2591_v57, %v2310_v55  ;;  %v983_v8 = vld [vmem:[%s3407_s9] sm:$0x3]  ;;  %s2716_s29 = sshra.s32 %s1857_s30, 4  ;;  %s2722_s14 = scalar_lea.hbm %s3409_s11, 16  ;;  %s2717_s29 = int_to_ptr.hbm [resolvable:$true] %s2716_s29 }
 0x18e   : > { %1419 = vmatpush.bf16.msra.mxu0 %v2279_v13  ;;  %1445 = vmatpush.bf16.msra.mxu2 %v2283_v15  ;;  %v985_v9 = vperm.slane %v983_v8, 0  ;;  %v986_v13 = vperm.slane %v983_v8, 1  ;;  %v2637_v8 = vld [vmem:[#allocation3 + $0xf4] sm:$0xf0]  ;;  %s2718_s15 = scalar_lea.hbm %s2717_s29, 8  ;;  %p2723_p1 = scmp.lt.s32.totalorder %s2717_s29, %s3409_s11 }
 0x18f   : > { %p2719_p12 = scmp.ne.s32.totalorder %s2717_s29, %s2718_s15  ;;  %p2724_p2 = scmp.lt.s32.totalorder %s2722_s14, %s2718_s15 }
 0x191   : > { %1432 = vmatpush.bf16.msra.mxu1 %v2343_v14  ;;  %1458 = vmatpush.bf16.msra.mxu3 %v2347_v19  ;;  %v1527_v14 = vpack.c.b16 %v1526_v11, %v1526_v11  ;;  %p2720_p13 = pnand %p2719_p12, %p2890_p4  ;;  %p2725_p3 = por %p2724_p2, %p2723_p1 }
 0x192   : > { %1420 = vmatpush.bf16.msra.mxu0 %v2271_v26  ;;  %1446 = vmatpush.bf16.msra.mxu2 %v2275_v28 }
 0x193   : > { %p2721_p0 = pneg %p2720_p13 }
 0x195   : > { %1433 = vmatpush.bf16.msra.mxu1 %v2335_v27  ;;  %1459 = vmatpush.bf16.msra.mxu3 %v2339_v32  ;;  %p2726_p5 = pnand %p2725_p3, %p2721_p0 }
 0x196   : > { %1421 = vmatpush.bf16.msra.mxu0 %v2263_v38  ;;  %1447 = vmatpush.bf16.msra.mxu2 %v2267_v40 }
 0x199   : > { %1434 = vmatpush.bf16.msra.mxu1 %v2327_v39  ;;  %1460 = vmatpush.bf16.msra.mxu3 %v2331_v44 }
 0x19a   : > { %1422 = vmatpush.bf16.msra.mxu0 %v2255_v50  ;;  %1448 = vmatpush.bf16.msra.mxu2 %v2259_v1 }
 0x19d   : > { %1435 = vmatpush.bf16.msra.mxu1 %v2319_v52  ;;  %1461 = vmatpush.bf16.msra.mxu3 %v2323_v56 }
 0x19e   : > { %1423 = vmatpush.bf16.msra.mxu0 %v2247_v63  ;;  %1449 = vmatpush.bf16.msra.mxu2 %v2251_v4  ;;  %v2432_v4 = vld [vmem:[#allocation3 + $0x70] sm:$0xf] }
 0x1a1   : > { %1436 = vmatpush.bf16.msra.mxu1 %v2311_v3  ;;  %1462 = vmatpush.bf16.msra.mxu3 %v2315_v5  ;;  %v2621_v5 = vld [vmem:[#allocation3 + $0x74] sm:$0xf0] }
 0x1a2   : > { %1480 = vmatpush.bf16.xpose.msrb.mxu0 %v3234_v22  ;;  %1450 = vmatmul.bf16.vlgmr.msra.gmra.mxu2 %v1252_v6 }
 0x1a3   : > { %1424 = vmatmul.bf16.vlgmr.msra.gmra.mxu0 %v1252_v6  ;;  %1536 = vmatpush.bf16.xpose.msrb.mxu2 %v1527_v14  ;;  %v2496_v6 = vld [vmem:[#allocation3 + $0xf0] sm:$0xf]  ;;  %v2424_v14 = vld [vmem:[#allocation3 + $0x60] sm:$0xf] }
 0x1a4   : > { %1437 = vmatmul.bf16.vlgmr.msra.gmra.mxu1 %v1253_v7  ;;  %1463 = vmatmul.bf16.vlgmr.msra.gmra.mxu3 %v1253_v7  ;;  %v2433_v7 = vor.u32 %v2621_v5, %v2432_v4  ;;  %v2627_v4 = vld [vmem:[#allocation3 + $0xa4] sm:$0xf0]  ;;  %v2610_v5 = vld [vmem:[#allocation3 + $0x24] sm:$0xf] }
 0x1aa   : > { %1784 = vmatpush.bf16.msra.mxu0 %v2433_v7 }
 0x200   : > { %v1165_v0 = vpop.f32.mrf.mxu0 }
 0x201   : > { %v1178_v10 = vpop.f32.mrf.mxu1  ;;  %v1166_v12 = vadd.f32 %v1165_v0, %v985_v9  ;;  %v2620_v9 = vld [vmem:[#allocation3 + $0x74] sm:$0xf]  ;;  %v2434_v0 = vld [vmem:[#allocation3 + $0x78] sm:$0xf0] }
 0x202   : > { %v2437_v11 = vor.u32 %v2620_v9, %v2434_v0  ;;  %v2626_v9 = vld [vmem:[#allocation3 + $0xa4] sm:$0xf]  ;;  %v2458_v0 = vld [vmem:[#allocation3 + $0xa8] sm:$0xf0] }
 0x203   : > { %v1179_v17 = vadd.f32 %v1178_v10, %v1166_v12  ;;  %v2497_v10 = vor.u32 %v2637_v8, %v2496_v6  ;;  %v2636_v12 = vld [vmem:[#allocation3 + $0xf4] sm:$0xf]  ;;  %v2394_v6 = vld [vmem:[#allocation3 + $0x28] sm:$0xf0] }
 0x204   : > { %1810 = vmatpush.bf16.msra.mxu2 %v2437_v11  ;;  %v2397_v8 = vor.u32 %v2610_v5, %v2394_v6  ;;  %v2461_v11 = vor.u32 %v2626_v9, %v2458_v0 }
 0x206   : > { %v1191_v15 = vpop.f32.mrf.mxu2 }
 0x207   : > { %v1192_v16 = vadd.f32 %v1191_v15, %v986_v13  ;;  %v1204_v18 = vpop.f32.mrf.mxu3  ;;  %v2498_v13 = vld [vmem:[#allocation3 + $0xf8] sm:$0xf0] }
 0x208   : > { %v1167_v20 = vpop.f32.mrf.mxu0  ;;  %v2501_v15 = vor.u32 %v2636_v12, %v2498_v13  ;;  %v2609_v12 = vld [vmem:[#allocation3 + $0x14] sm:$0xf0]  ;;  %v2448_v13 = vld [vmem:[#allocation3 + $0x90] sm:$0xf] }
 0x209   : > { %v1205_v19 = vadd.f32 %v1204_v18, %v1192_v16  ;;  %v1180_v21 = vpop.f32.mrf.mxu1  ;;  %v2619_v16 = vld [vmem:[#allocation3 + $0x64] sm:$0xf0] }
 0x20a   : > { %v2635_v18 = vld [vmem:[#allocation3 + $0xe4] sm:$0xf0]  ;;  %v2618_v21 = vld [vmem:[#allocation3 + $0x64] sm:$0xf] }
 0x20b   : > { %v1208_v23 = vpack.c.bf16 %v1205_v19, %v1179_v17  ;;  %v2488_v17 = vld [vmem:[#allocation3 + $0xe0] sm:$0xf]  ;;  %v2425_v19 = vor.u32 %v2619_v16, %v2424_v14  ;;  %v2625_v14 = vld [vmem:[#allocation3 + $0x94] sm:$0xf0] }
 0x20c   : > { %v2489_v20 = vor.u32 %v2635_v18, %v2488_v17  ;;  %v2449_v16 = vor.u32 %v2625_v14, %v2448_v13  ;;  %v2608_v17 = vld [vmem:[#allocation3 + $0x14] sm:$0xf]  ;;  %v2386_v18 = vld [vmem:[#allocation3 + $0x18] sm:$0xf0] }
 0x20d   : > { %v1553_v24 = vunpack.c.h.b16 %v1208_v23  ;;  %v1502_v25 = vsel %vm1500_vm0, %v1208_v23, 0  ;;  %v2426_v23 = vld [vmem:[#allocation3 + $0x68] sm:$0xf0]  ;;  %1785 = vmatpush.bf16.msra.mxu0 %v2425_v19  ;;  %v2624_v19 = vld [vmem:[#allocation3 + $0x94] sm:$0xf] }
 0x20e   : > { %v1193_v26 = vpop.f32.mrf.mxu2  ;;  %1511 = vmatpush.bf16.msrb.mxu1 %v1502_v25  ;;  %v2429_v25 = vor.u32 %v2618_v21, %v2426_v23  ;;  %v2450_v21 = vld [vmem:[#allocation3 + $0x98] sm:$0xf0]  ;;  %v2376_v23 = vld [vmem:[#allocation3] sm:$0xf] }
 0x20f   : > { %v1554_v27 = vpack.c.b16 %v1553_v24, %v1553_v24  ;;  %v1206_v28 = vpop.f32.mrf.mxu3  ;;  %v2634_v24 = vld [vmem:[#allocation3 + $0xe4] sm:$0xf]  ;;  %v2490_v26 = vld [vmem:[#allocation3 + $0xe8] sm:$0xf0] }
 0x210   : > { %1811 = vmatpush.bf16.msra.mxu2 %v2429_v25  ;;  %v2416_v28 = vld [vmem:[#allocation3 + $0x50] sm:$0xf]  ;;  %v2453_v25 = vor.u32 %v2624_v19, %v2450_v21 }
 0x211   : > { %v1559_v22 = vsel %vm1500_vm0, %v1554_v27, 0  ;;  %v2493_v27 = vor.u32 %v2634_v24, %v2490_v26  ;;  %v2607_v24 = vld [vmem:[#allocation3 + $0x4] sm:$0xf0]  ;;  %v2440_v26 = vld [vmem:[#allocation3 + $0x80] sm:$0xf] }
 0x212   : > { %1568 = vmatpush.bf16.msrb.mxu3 %v1559_v22  ;;  %1797 = vmatpush.bf16.msra.mxu1 %v2497_v10  ;;  %v2617_v22 = vld [vmem:[#allocation3 + $0x54] sm:$0xf0]  ;;  %v2384_v10 = vld [vmem:[#allocation3 + $0x10] sm:$0xf] }
 0x216   : > { %1823 = vmatpush.bf16.msra.mxu3 %v2501_v15  ;;  %1798 = vmatpush.bf16.msra.mxu1 %v2489_v20  ;;  %v2385_v15 = vor.u32 %v2609_v12, %v2384_v10  ;;  %v2389_v20 = vor.u32 %v2608_v17, %v2386_v18 }
 0x21a   : > { %1824 = vmatpush.bf16.msra.mxu3 %v2493_v27  ;;  %v2623_v27 = vld [vmem:[#allocation3 + $0x84] sm:$0xf0] }
 0x220   : > { %v1425_v31 = vpop.f32.mrf.mxu0 }
 0x221   : > { %v1438_v32 = vpop.f32.mrf.mxu1  ;;  %v1426_v33 = vadd.f32 %v1425_v31, %v1245_v30  ;;  %v2417_v30 = vor.u32 %v2617_v22, %v2416_v28  ;;  %v2633_v31 = vld [vmem:[#allocation3 + $0xd4] sm:$0xf0]  ;;  %v2606_v28 = vld [vmem:[#allocation3 + $0x4] sm:$0xf]  ;;  %v2377_v22 = vor.u32 %v2607_v24, %v2376_v23 }
 0x223   : > { %v1439_v35 = vadd.f32 %v1438_v32, %v1426_v33  ;;  %v2616_v32 = vld [vmem:[#allocation3 + $0x54] sm:$0xf]  ;;  %v2418_v33 = vld [vmem:[#allocation3 + $0x58] sm:$0xf0]  ;;  %1786 = vmatpush.bf16.msra.mxu0 %v2417_v30  ;;  %v2622_v30 = vld [vmem:[#allocation3 + $0x84] sm:$0xf] }
 0x225   : > { %v1451_v36 = vpop.f32.mrf.mxu2  ;;  %v1468_v41 = vmul.f32 0.088388346, %v1439_v35  ;;  %v2421_v35 = vor.u32 %v2616_v32, %v2418_v33  ;;  %v2441_v32 = vor.u32 %v2623_v27, %v2440_v26 }
 0x226   : > { %v1452_v37 = vadd.f32 %v1451_v36, %v1246_v34  ;;  %v2481_v34 = vor.u32 %v2633_v31, %v2480_v29  ;;  %v2632_v36 = vld [vmem:[#allocation3 + $0xd4] sm:$0xf]  ;;  %v2378_v29 = vld [vmem:[#allocation3 + $0x8] sm:$0xf0] }
 0x227   : > { %v1464_v38 = vpop.f32.mrf.mxu3  ;;  %1812 = vmatpush.bf16.msra.mxu2 %v2421_v35  ;;  %v2442_v31 = vld [vmem:[#allocation3 + $0x88] sm:$0xf0]  ;;  %v2381_v33 = vor.u32 %v2606_v28, %v2378_v29 }
 0x228   : > { %v1427_v39 = vpop.f32.mrf.mxu0  ;;  %v1465_v42 = vadd.f32 %v1464_v38, %v1452_v37  ;;  %v2482_v37 = vld [vmem:[#allocation3 + $0xd8] sm:$0xf0]  ;;  %1799 = vmatpush.bf16.msra.mxu1 %v2481_v34  ;;  %v2445_v34 = vor.u32 %v2622_v30, %v2442_v31 }
 0x229   : > { %v1440_v40 = vpop.f32.mrf.mxu1  ;;  %v2485_v38 = vor.u32 %v2632_v36, %v2482_v37  ;;  %v2408_v39 = vld [vmem:[#allocation3 + $0x40] sm:$0xf] }
 0x22a   : > { %v1469_v43 = vmul.f32 0.088388346, %v1465_v42  ;;  %v2615_v40 = vld [vmem:[#allocation3 + $0x44] sm:$0xf0] }
 0x22b   : > { %1825 = vmatpush.bf16.msra.mxu3 %v2485_v38  ;;  %v2409_v42 = vor.u32 %v2615_v40, %v2408_v39 }
 0x22c   : > { %v1470_v44 = vpack.c.bf16 %v1469_v43, %v1468_v41  ;;  %v2472_v41 = vld [vmem:[#allocation3 + $0xc0] sm:$0xf]  ;;  %v2631_v43 = vld [vmem:[#allocation3 + $0xc4] sm:$0xf0] }
 0x22d   : > { %v1453_v45 = vpop.f32.mrf.mxu2  ;;  %1787 = vmatpush.bf16.msra.mxu0 %v2409_v42 }
 0x22e   : > { %v1522_v46 = vunpack.c.h.b16 %v1470_v44  ;;  %1481 = vmatmul.bf16.vlgmr.msrb.gmra.mxu0 %v1470_v44  ;;  %v2614_v44 = vld [vmem:[#allocation3 + $0x44] sm:$0xf]  ;;  %v2410_v45 = vld [vmem:[#allocation3 + $0x48] sm:$0xf0] }
 0x22f   : > { %v1466_v47 = vpop.f32.mrf.mxu3 }
 0x230   : > { %v1523_v48 = vpack.c.b16 %v1522_v46, %v1522_v46  ;;  %v2473_v46 = vor.u32 %v2631_v43, %v2472_v41  ;;  %v2413_v47 = vor.u32 %v2614_v44, %v2410_v45 }
 0x232   : > { %1537 = vmatmul.bf16.vlgmr.msrb.gmra.mxu2 %v1523_v48  ;;  %v2630_v48 = vld [vmem:[#allocation3 + $0xc4] sm:$0xf]  ;;  %1800 = vmatpush.bf16.msra.mxu1 %v2473_v46 }
 0x233   : > { %1813 = vmatpush.bf16.msra.mxu2 %v2413_v47 }
 0x2ab   : > { %v1482_v49 = vpop.f32.mrf.mxu0 }
 0x2ac   : > { %v1487_v53 = vsel %vm1486_vm1, %v1482_v49, -inf }
 0x2b3   : > { %v1484_v50 = vpop.f32.mrf.mxu0 }
 0x2b5   : > { %v1538_v51 = vpop.f32.mrf.mxu2 }
 0x2b6   : > { %v1542_v52 = vsel %vm1486_vm1, %v1538_v51, -inf }
 0x2b7   : > { %1543 = vmax.xlane.f32.xlu0 %v1542_v52  ;;  %v2613_v52 = vld [vmem:[#allocation3 + $0x34] sm:$0xf0] }
 0x2bd   : > { %v1540_v1 = vpop.f32.mrf.mxu2 }
 0x2be   : > { %v2464_v1 = vld [vmem:[#allocation3 + $0xb0] sm:$0xf] }
 0x2bf   : > { %1488 = vmax.xlane.f32.xlu0 %v1487_v53 }
 0x32a   : > { %v1544_v54 = vpop.xlane.xlu0 %1543 }
 0x32b   : > { %v1545_v55 = vsub.f32 %v1538_v51, %v1544_v54  ;;  %v2400_v51 = vld [vmem:[#allocation3 + $0x30] sm:$0xf]  ;;  %v2629_v54 = vld [vmem:[#allocation3 + $0xb4] sm:$0xf0] }
 0x32c   : > { %v2401_v53 = vor.u32 %v2613_v52, %v2400_v51  ;;  %v1611_v52 = vld [vmem:[%s3408_s10] sm:$0x3] }
 0x32d   : > { %v1546_v56 = vmul.f32 1.442695, %v1545_v55  ;;  %v2612_v55 = vld [vmem:[#allocation3 + $0x34] sm:$0xf] }
 0x32e   : > { %1788 = vmatpush.bf16.msra.mxu0 %v2401_v53 }
 0x32f   : > { %2694 = vpow2.f32 %v1546_v56  ;;  %v2402_v56 = vld [vmem:[#allocation3 + $0x38] sm:$0xf0] }
 0x332   : > { %v1489_v57 = vpop.xlane.xlu0 %1488 }
 0x333   : > { %v1490_v58 = vsub.f32 %v1482_v49, %v1489_v57  ;;  %v2474_v49 = vld [vmem:[#allocation3 + $0xc8] sm:$0xf0]  ;;  %v2465_v57 = vor.u32 %v2629_v54, %v2464_v1  ;;  %v1613_v54 = vperm.slane %v1611_v52, 0 }
 0x334   : > { %v2477_v50 = vor.u32 %v2630_v48, %v2474_v49 }
 0x335   : > { %v2695_v59 = vpop.eup %2694  ;;  %v1491_v60 = vmul.f32 1.442695, %v1490_v58  ;;  %v2405_v58 = vor.u32 %v2612_v55, %v2402_v56  ;;  %1801 = vmatpush.bf16.msra.mxu1 %v2465_v57  ;;  %v1614_v55 = vperm.slane %v1611_v52, 1 }
 0x336   : > { %v1551_v61 = vpack.c.bf16 %v2695_v59, %v2695_v59  ;;  %v1548_v3 = vsel %vm1486_vm1, %v2695_v59, 0.0  ;;  %1826 = vmatpush.bf16.msra.mxu3 %v2477_v50  ;;  %v2628_v59 = vld [vmem:[#allocation3 + $0xb4] sm:$0xf] }
 0x337   : > { %2696 = vpow2.f32 %v1491_v60  ;;  %v2466_v60 = vld [vmem:[#allocation3 + $0xb8] sm:$0xf0]  ;;  %1814 = vmatpush.bf16.msra.mxu2 %v2405_v58 }
 0x338   : > { %2373 = vmatmul.msk.bf16.vlgmr.msrb.gmra.mxu3 %vm1486_vm1, %v1551_v61  ;;  %v2469_v61 = vor.u32 %v2628_v59, %v2466_v60 }
 0x33a   : > { %1827 = vmatpush.bf16.msra.mxu3 %v2469_v61 }
 0x33b   : > { %1815 = vmatpush.bf16.msra.mxu2 %v2397_v8 }
 0x33d   : > { %v2697_v62 = vpop.eup %2696 }
 0x33e   : > { %v1496_v63 = vpack.c.bf16 %v2697_v62, %v2697_v62  ;;  %v1493_v2 = vsel %vm1486_vm1, %v2697_v62, 0.0  ;;  %v2392_v62 = vld [vmem:[#allocation3 + $0x20] sm:$0xf]  ;;  %1828 = vmatpush.bf16.msra.mxu3 %v2461_v11 }
 0x33f   : > { %1494 = vadd.xlane.f32.xlu1 %v1493_v2  ;;  %v2456_v2 = vld [vmem:[#allocation3 + $0xa0] sm:$0xf]  ;;  %1816 = vmatpush.bf16.msra.mxu2 %v2389_v20 }
 0x340   : > { %2372 = vmatmul.msk.bf16.vlgmr.msrb.gmra.mxu1 %vm1486_vm1, %v1496_v63  ;;  %v2611_v63 = vld [vmem:[#allocation3 + $0x24] sm:$0xf0]  ;;  %v2457_v7 = vor.u32 %v2627_v4, %v2456_v2 }
 0x342   : > { %1802 = vmatpush.bf16.msra.mxu1 %v2457_v7  ;;  %1829 = vmatpush.bf16.msra.mxu3 %v2453_v25 }
 0x343   : > { %1817 = vmatpush.bf16.msra.mxu2 %v2381_v33 }
 0x346   : > { %1803 = vmatpush.bf16.msra.mxu1 %v2449_v16  ;;  %1830 = vmatpush.bf16.msra.mxu3 %v2445_v34 }
 0x347   : > { %1549 = vadd.xlane.f32.xlu1 %v1548_v3  ;;  %v2393_v3 = vor.u32 %v2611_v63, %v2392_v62 }
 0x349   : > { %1789 = vmatpush.bf16.msra.mxu0 %v2393_v3 }
 0x34a   : > { %1804 = vmatpush.bf16.msra.mxu1 %v2441_v32 }
 0x34d   : > { %1790 = vmatpush.bf16.msra.mxu0 %v2385_v15 }
 0x351   : > { %1791 = vmatpush.bf16.msra.mxu0 %v2377_v22 }
 0x3b2   : > { %v1495_v35 = vpop.xlane.xlu1 %1494 }
 0x3b3   : > { %2698 = vrcp.f32 %v1495_v35 }
 0x3b9   : > { %v2699_v38 = vpop.eup %2698 }
 0x3ba   : > { %v1550_v36 = vpop.xlane.xlu1 %1549 }
 0x3bb   : > { %2700 = vrcp.f32 %v1550_v36  ;;  %v1570_v37 = vpop.f32.mrf.mxu3 }
 0x3bd   : > { %v1513_v39 = vpop.f32.mrf.mxu1 }
 0x3be   : > { %v1518_v40 = vmul.f32 %v2699_v38, %v1513_v39 }
 0x3c0   : > { %v1519_v41 = vpack.c.bf16 %v1518_v40, %v1518_v40 }
 0x3c1   : > { %v2701_v42 = vpop.eup %2700 }
 0x3c2   : > { %v1575_v43 = vmul.f32 %v2701_v42, %v1570_v37  ;;  %1520 = vst [vmem:[#allocation7] sm:$0xf] %v1519_v41 }
 0x3c3   : > { %v1572_v44 = vpop.f32.mrf.mxu3 }
 0x3c4   : > { %v1576_v45 = vpack.c.bf16 %v1575_v43, %v1575_v43 }
 0x3c5   : > { %v1515_v46 = vpop.f32.mrf.mxu1 }
 0x3c6   : > { %1577 = vst [vmem:[#allocation7 + $0x4] sm:$0xf] %v1576_v45 }
 0x3cd   : > { %v1578_v47 = vld [vmem:[#allocation7] sm:$0xff] }
 0x3ce   : > { %v1618_v48 = vunpack.c.l.b16 %v1578_v47  ;;  %v1619_v49 = vunpack.c.h.b16 %v1578_v47 }
 0x3d0   : > { %v1620_v50 = vpack.c.b16 %v1618_v48, %v1618_v48  ;;  %v1621_v51 = vpack.c.b16 %v1619_v49, %v1619_v49 }
 0x3d2   : > { %1792 = vmatmul.bf16.vlgmr.msra.gmra.mxu0 %v1620_v50  ;;  %1805 = vmatmul.bf16.vlgmr.msra.gmra.mxu1 %v1621_v51 }
 0x3d3   : > { %1818 = vmatmul.bf16.vlgmr.msra.gmra.mxu2 %v1620_v50  ;;  %1831 = vmatmul.bf16.vlgmr.msra.gmra.mxu3 %v1621_v51 }
 0x44f   : > { %v1793_v1 = vpop.f32.mrf.mxu0  ;;  %v1806_v53 = vpop.f32.mrf.mxu1 }
 0x450   : > { %v1794_v56 = vadd.f32 %v1793_v1, %v1613_v54 }
 0x452   : > { %v1807_v62 = vadd.f32 %v1806_v53, %v1794_v56 }
 0x456   : > { %v1819_v57 = vpop.f32.mrf.mxu2  ;;  %v1832_v58 = vpop.f32.mrf.mxu3 }
 0x457   : > { %v1820_v59 = vadd.f32 %v1819_v57, %v1614_v55  ;;  %v1795_v60 = vpop.f32.mrf.mxu0  ;;  %v1808_v61 = vpop.f32.mrf.mxu1 }
 0x459   : > { %v1833_v63 = vadd.f32 %v1832_v58, %v1820_v59 }
 0x45b   : > { %v1836_v2 = vpack.c.bf16 %v1833_v63, %v1807_v62 }
 0x45d   : > { %1837 = vst [vmem:[%s329_s19] sm:$0xff] %v1836_v2 }
 0x45e   : > { %v1821_v3 = vpop.f32.mrf.mxu2  ;;  %v1834_v4 = vpop.f32.mrf.mxu3 }
 0x45f   : > { %2729 = shalt.err (!%p2726_p5)
}
 0x460   : > { %2639 = dma.vmem_to_hbm [thread:$0]  (%p2890_p4), %s1855_s12, 128, %s1857_s30, %s1839_s17  }
 0x461 PF: > { %s3428_s19 = sld [smem:[#allocation26_spill]] }
 0x462   : > { %s3429_s13 = sld [smem:[#allocation23_spill]] }
 0x467   : > { %p2645_p6 = scmp.ge.s32.totalorder %s3428_s19, 2 }
 0x468   : > { %s1868_s28 = sand.u32 1, %s3429_s13  }
 0x469   : > { %p2642_p7 = pnand %p2645_p6, %p2897_p8  ;;  %s1869_s25 = scalar_lea.sflag [#allocation9], %s1868_s28 }
 0x46b   : > { %p2643_p9 = pneg %p2642_p7 }
 0x46d   : > { %2763 = dma.done.wait (%p2643_p9), %s1869_s25, 128  }
 0x46e   : > { %2765 = vsyncadd (%p2643_p9), %s1869_s25, 4294967168  ;;  %s24_s22 = sadd.s32 1, %s3428_s19   ;;  %s3431_s21 = sld [smem:[#allocation24_spill]] }
 0x46f   : > { %p21_p10 = scmp.ge.s32.totalorder %s24_s22, 4   ;;  %s3432_s19 = sld [smem:[#allocation29_spill]] }
 0x470   : > { %s3433_s20 = sld [smem:[#allocation25_spill]]  ;;  %s3435_s17 = smov %s2772_s18 }
 0x471   : > { %s3434_s27 = sld [smem:[#allocation27_spill]] }
 0x473   :  { %23 = sbr.rel (!%p21_p10) target bundleno = 4 (0x4), region = 189 }
 0x474   : > { %s3436_s18 = smov %s3431_s21 }
 0x477   : > { %s3437_s21 = smov %s3434_s27 }
 0x478   :  { %1875 = vsyncpa [#allocation9], 1 }
 0x479   :  { %1877 = vsyncpa [#allocation9 + $0x1], 1 }

</bundles_post_ra>
